<compile_context>
chip_gen: v7x
topology: tpu7x:2x2x1
jax: 0.10.0
libtpu: 0.0.40
codegen_flags: <defaults>
</compile_context>

<pallas_src>
import functools

import jax
import jax.numpy as jnp
from jax.experimental import pallas as pl
from jax.experimental.pallas import tpu as pltpu


def _pick_tile(n, candidates):
    for c in candidates:
        if n % c == 0:
            return c
    return n


# ---------------------------------------------------------------------------
# Attention kernel (flash-style online softmax over the kv grid axis).
# ---------------------------------------------------------------------------
def _attn_kernel(q_ref, k_ref, v_ref, o_ref, qf_scr, m_scr, l_scr, acc_scr, *,
                 scale, num_groups, heads_per_group, head_dim, q_tile):
    G, Hpg, Dh, TQ = num_groups, heads_per_group, head_dim, q_tile
    ki = pl.program_id(1)
    nkv = pl.num_programs(1)
    NEG = jnp.float32(-1e30)

    @pl.when(ki == 0)
    def _init():
        m_scr[...] = jnp.full(m_scr.shape, NEG, dtype=m_scr.dtype)
        l_scr[...] = jnp.zeros(l_scr.shape, dtype=l_scr.dtype)
        acc_scr[...] = jnp.zeros(acc_scr.shape, dtype=acc_scr.dtype)
        # Fold the heads of each group into the matmul M dimension and apply
        # the softmax scale once per q tile (not per kv step, not on [*,S,S]).
        for g in range(G):
            for h in range(Hpg):
                hh = g * Hpg + h
                q_h = q_ref[:, hh * Dh:(hh + 1) * Dh].astype(jnp.float32) * scale
                qf_scr[g, h * TQ:(h + 1) * TQ, :] = q_h.astype(qf_scr.dtype)

    for g in range(G):
        k_g = k_ref[:, g * Dh:(g + 1) * Dh]                  # [TKV, Dh] bf16
        v_g = v_ref[:, g * Dh:(g + 1) * Dh]                  # [TKV, Dh] bf16
        q_g = qf_scr[g]                                      # [Hpg*TQ, Dh] bf16

        # scores: bf16 MXU inputs, f32 accumulate.
        s = jax.lax.dot_general(q_g, k_g, (((1,), (1,)), ((), ())),
                                preferred_element_type=jnp.float32)

        m_prev = m_scr[g]                                    # [Hpg*TQ, 1]
        m_new = jnp.maximum(m_prev, jnp.max(s, axis=-1, keepdims=True))
        alpha = jnp.exp(m_prev - m_new)                      # [Hpg*TQ, 1]
        p = jnp.exp(s - m_new)                               # [Hpg*TQ, TKV] f32
        l_scr[g] = alpha * l_scr[g] + jnp.sum(p, axis=-1, keepdims=True)
        pv = jax.lax.dot_general(p.astype(v_g.dtype), v_g,   # bf16 P.V matmul
                                 (((1,), (0,)), ((), ())),
                                 preferred_element_type=jnp.float32)
        acc_scr[g] = alpha * acc_scr[g] + pv
        m_scr[g] = m_new

    @pl.when(ki == nkv - 1)
    def _finalize():
        for g in range(G):
            # Deferred normalization: one multiply on [Hpg*TQ, Dh], EUP recip.
            out_g = acc_scr[g] * pl.reciprocal(l_scr[g], approx=True)
            for h in range(Hpg):
                hh = g * Hpg + h
                o_ref[:, hh * Dh:(hh + 1) * Dh] = (
                    out_g[h * TQ:(h + 1) * TQ, :].astype(o_ref.dtype))


def _gqa_attention(q2d, k2d, v2d, *, num_heads, num_groups, head_dim, scale,
                   q_tile, kv_tile):
    S = q2d.shape[0]
    H, G, Dh = num_heads, num_groups, head_dim
    Hpg = H // G
    M = Hpg * q_tile

    cost = pl.CostEstimate(
        flops=int(4 * H * S * S * Dh),
        transcendentals=int(H * S * S),
        bytes_accessed=int(2 * (2 * S * H * Dh + 2 * S * G * Dh)),
    )
    kernel = functools.partial(
        _attn_kernel, scale=scale, num_groups=G, heads_per_group=Hpg,
        head_dim=Dh, q_tile=q_tile)

    return pl.pallas_call(
        kernel,
        out_shape=jax.ShapeDtypeStruct((S, H * Dh), q2d.dtype),
        grid=(S // q_tile, S // kv_tile),
        in_specs=[
            pl.BlockSpec((q_tile, H * Dh), lambda qi, ki: (qi, 0)),
            pl.BlockSpec((kv_tile, G * Dh), lambda qi, ki: (ki, 0)),
            pl.BlockSpec((kv_tile, G * Dh), lambda qi, ki: (ki, 0)),
        ],
        out_specs=pl.BlockSpec((q_tile, H * Dh), lambda qi, ki: (qi, 0)),
        scratch_shapes=[
            pltpu.VMEM((G, M, Dh), q2d.dtype),       # folded + scaled q (bf16)
            pltpu.VMEM((G, M, 1), jnp.float32),      # running max
            pltpu.VMEM((G, M, 1), jnp.float32),      # running denominator
            pltpu.VMEM((G, M, Dh), jnp.float32),     # running numerator
        ],
        compiler_params=pltpu.CompilerParams(
            dimension_semantics=("parallel", "arbitrary")),
        cost_estimate=cost,
    )(q2d, k2d, v2d)


# ---------------------------------------------------------------------------
# Output projection: tiled matmul with f32 accumulator (y = x @ w_t + b).
# ---------------------------------------------------------------------------
def _proj_kernel(x_ref, w_ref, b_ref, o_ref, acc_ref):
    @pl.when(pl.program_id(2) == 0)
    def _():
        acc_ref[...] = jnp.zeros_like(acc_ref)

    acc_ref[...] += jnp.dot(x_ref[...], w_ref[...],
                            preferred_element_type=jnp.float32)

    @pl.when(pl.program_id(2) == pl.num_programs(2) - 1)
    def _():
        o_ref[...] = (acc_ref[...] + b_ref[...].astype(jnp.float32)
                      ).astype(o_ref.dtype)


def _out_projection(x, w_t, bias, *, tm, tn, tk):
    S, K = x.shape
    N = w_t.shape[1]
    cost = pl.CostEstimate(
        flops=int(2 * S * K * N + S * N),
        transcendentals=0,
        bytes_accessed=int(2 * (S * K + K * N + N + S * N)),
    )
    return pl.pallas_call(
        _proj_kernel,
        out_shape=jax.ShapeDtypeStruct((S, N), x.dtype),
        grid=(S // tm, N // tn, K // tk),
        in_specs=[
            pl.BlockSpec((tm, tk), lambda i, j, k: (i, k)),
            pl.BlockSpec((tk, tn), lambda i, j, k: (k, j)),
            pl.BlockSpec((1, tn), lambda i, j, k: (0, j)),
        ],
        out_specs=pl.BlockSpec((tm, tn), lambda i, j, k: (i, j)),
        scratch_shapes=[pltpu.VMEM((tm, tn), jnp.float32)],
        compiler_params=pltpu.CompilerParams(
            dimension_semantics=("parallel", "parallel", "arbitrary")),
        cost_estimate=cost,
    )(x, w_t, bias.reshape(1, -1))


# ---------------------------------------------------------------------------
# Module-level forward.
# ---------------------------------------------------------------------------
def gqa_forward(query, key, value, w_t, bias, *, num_heads, num_groups, head_dim,
                mask=None, scale_value=None):
    """Pallas implementation of GroupedQueryAttentionDirect.forward.

    query [S, H, Dh], key/value [S, G, Dh] (bf16); w_t is the nn.Linear weight
    pre-transposed so y = x @ w_t + b == x @ W.T + b. Returns [S, H, Dh].
    """
    del mask  # TODO(synk): reference module never applies the mask; kept a no-op.
    if num_heads % num_groups != 0:
        raise ValueError("num_heads must be divisible by num_groups")
    S = query.shape[0]
    hidden = num_heads * head_dim
    scale = float(scale_value) if scale_value is not None else float(head_dim) ** (-0.5)

    # Free contiguous reshapes only — no wrapper-side HBM transpose passes.
    q2d = query.reshape(S, num_heads * head_dim)
    k2d = key.reshape(S, num_groups * head_dim)
    v2d = value.reshape(S, num_groups * head_dim)

    q_tile = _pick_tile(S, (128, 64, 32, 16, 8))
    kv_tile = _pick_tile(S, (256, 128, 64, 32, 16, 8))

    ctx = _gqa_attention(q2d, k2d, v2d, num_heads=num_heads,
                         num_groups=num_groups, head_dim=head_dim,
                         scale=scale, q_tile=q_tile, kv_tile=kv_tile)

    tm = _pick_tile(S, (256, 128, 64, 32, 16, 8))
    tn = _pick_tile(hidden, (256, 128))
    tk = _pick_tile(hidden, (512, 256, 128))
    out = _out_projection(ctx, w_t, bias, tm=tm, tn=tn, tk=tk)
    return out.reshape(S, num_heads, head_dim)


if __name__ == "__main__":
    # Small, module-consistent shapes.
    num_heads, num_groups, head_dim = 8, 2, 32
    seq_len = 16
    hidden = num_heads * head_dim  # 256

    key0 = jax.random.PRNGKey(0)
    kq, kk, kv_, kw, kb = jax.random.split(key0, 5)

    query = jax.random.normal(kq, (seq_len, num_heads, head_dim), dtype=jnp.bfloat16)
    key_t = jax.random.normal(kk, (seq_len, num_groups, head_dim), dtype=jnp.bfloat16)
    value = jax.random.normal(kv_, (seq_len, num_groups, head_dim), dtype=jnp.bfloat16)
    mask = jnp.zeros((seq_len, seq_len), dtype=jnp.bfloat16)  # unused (as in reference)

    # Deterministic nn.Linear(hidden, hidden, bf16) parameters, pre-transposed.
    w = (jax.random.normal(kw, (hidden, hidden), dtype=jnp.float32) * 0.02).astype(jnp.bfloat16)
    w_t = jnp.transpose(w)
    bias = (jax.random.normal(kb, (hidden,), dtype=jnp.float32) * 0.02).astype(jnp.bfloat16)

    out = gqa_forward(query, key_t, value, w_t, bias,
                      num_heads=num_heads, num_groups=num_groups,
                      head_dim=head_dim, mask=mask, scale_value=None)
    out = jax.block_until_ready(out)
    assert out.shape == (seq_len, num_heads, head_dim)
    assert out.dtype == jnp.bfloat16

    # Pure-JAX f32 reference of the module forward for a sanity check.
    def _ref(query, key_t, value, w_t, bias):
        S, H, Dh = query.shape
        G = key_t.shape[1]
        Hpg = H // G
        q = jnp.transpose(query.astype(jnp.float32), (1, 0, 2)).reshape(G, Hpg, S, Dh)
        k = jnp.transpose(key_t.astype(jnp.float32), (1, 0, 2))
        v = jnp.transpose(value.astype(jnp.float32), (1, 0, 2))
        s = jnp.einsum("ghqd,gkd->ghqk", q, k) * (float(Dh) ** -0.5)
        p = jax.nn.softmax(s, axis=-1)
        o = jnp.einsum("ghqk,gkd->ghqd", p, v).reshape(H, S, Dh)
        o = jnp.transpose(o, (1, 0, 2)).reshape(S, H * Dh)
        y = o @ w_t.astype(jnp.float32) + bias.astype(jnp.float32)
        return y.reshape(S, H, Dh)

    ref = _ref(query, key_t, value, w_t, bias)
    err = float(jnp.max(jnp.abs(out.astype(jnp.float32) - ref)))
    assert err < 5e-2, f"max abs error {err}"
    print("KERNEL_OK")
</pallas_src>

<mosaic_0001>
module attributes {stable_mosaic.version = 11 : i64} {
  func.func @_attn_kernel(%arg0: i32, %arg1: i32, %arg2: memref<16x256xbf16, #tpu.memory_space<vmem>>, %arg3: memref<16x64xbf16, #tpu.memory_space<vmem>>, %arg4: memref<16x64xbf16, #tpu.memory_space<vmem>>, %arg5: memref<16x256xbf16, #tpu.memory_space<vmem>>, %arg6: memref<2x64x32xbf16, #tpu.memory_space<vmem>>, %arg7: memref<2x64x1xf32, #tpu.memory_space<vmem>>, %arg8: memref<2x64x1xf32, #tpu.memory_space<vmem>>, %arg9: memref<2x64x32xf32, #tpu.memory_space<vmem>>) attributes {dimension_semantics = [#tpu.dimension_semantics<parallel>, #tpu.dimension_semantics<arbitrary>], iteration_bounds = array<i64: 1, 1>, scalar_prefetch = 0 : i64, scratch_operands = 4 : i64, tpu.core_type = #tpu.core_type<tc>, window_params = [{transform_indices = @transform_0, window_bounds = array<i64: 16, 256>}, {transform_indices = @transform_1, window_bounds = array<i64: 16, 64>}, {transform_indices = @transform_2, window_bounds = array<i64: 16, 64>}, {transform_indices = @transform_3, window_bounds = array<i64: 16, 256>}]} {
    %c0_i32 = arith.constant 0 : i32
    %0 = arith.cmpi eq, %arg1, %c0_i32 : i32
    %1 = arith.extui %0 : i1 to i32
    %cst = arith.constant -1.000000e+30 : f32
    %c0_i32_0 = arith.constant 0 : i32
    %2 = arith.cmpi ne, %1, %c0_i32_0 : i32
    scf.if %2 {
      %80 = vector.broadcast %cst : f32 to vector<2x64x1xf32>
      %c0_58 = arith.constant 0 : index
      %c0_59 = arith.constant 0 : index
      %c0_60 = arith.constant 0 : index
      %81 = vector.load %arg7[%c0_58, %c0_59, %c0_60] : memref<2x64x1xf32, #tpu.memory_space<vmem>>, vector<2x64x1xf32>
      tpu.vector_store %arg7[%c0_58, %c0_59, %c0_60], %80 {strides = array<i32>} : memref<2x64x1xf32, #tpu.memory_space<vmem>>, vector<2x64x1xf32>,
      %cst_61 = arith.constant 0.000000e+00 : f32
      %82 = vector.broadcast %cst_61 : f32 to vector<2x64x1xf32>
      %c0_62 = arith.constant 0 : index
      %c0_63 = arith.constant 0 : index
      %c0_64 = arith.constant 0 : index
      %83 = vector.load %arg8[%c0_62, %c0_63, %c0_64] : memref<2x64x1xf32, #tpu.memory_space<vmem>>, vector<2x64x1xf32>
      tpu.vector_store %arg8[%c0_62, %c0_63, %c0_64], %82 {strides = array<i32>} : memref<2x64x1xf32, #tpu.memory_space<vmem>>, vector<2x64x1xf32>,
      %cst_65 = arith.constant 0.000000e+00 : f32
      %84 = vector.broadcast %cst_65 : f32 to vector<2x64x32xf32>
      %c0_66 = arith.constant 0 : index
      %c0_67 = arith.constant 0 : index
      %c0_68 = arith.constant 0 : index
      %85 = vector.load %arg9[%c0_66, %c0_67, %c0_68] : memref<2x64x32xf32, #tpu.memory_space<vmem>>, vector<2x64x32xf32>
      tpu.vector_store %arg9[%c0_66, %c0_67, %c0_68], %84 {strides = array<i32>} : memref<2x64x32xf32, #tpu.memory_space<vmem>>, vector<2x64x32xf32>,
      %c0_69 = arith.constant 0 : index
      %c0_70 = arith.constant 0 : index
      %86 = vector.load %arg2[%c0_69, %c0_70] : memref<16x256xbf16, #tpu.memory_space<vmem>>, vector<16x32xbf16>
      %87 = arith.extf %86 : vector<16x32xbf16> to vector<16x32xf32>
      %cst_71 = arith.constant 0.176776692 : f32
      %88 = vector.broadcast %cst_71 : f32 to vector<16x32xf32>
      %89 = arith.mulf %87, %88 : vector<16x32xf32>
      %90 = arith.truncf %89 : vector<16x32xf32> to vector<16x32xbf16>
      %c0_72 = arith.constant 0 : index
      %c0_73 = arith.constant 0 : index
      %c0_74 = arith.constant 0 : index
      %91 = vector.load %arg6[%c0_72, %c0_73, %c0_74] : memref<2x64x32xbf16, #tpu.memory_space<vmem>>, vector<1x16x32xbf16>
      %92 = vector.shape_cast %91 : vector<1x16x32xbf16> to vector<16x32xbf16>
      %93 = vector.shape_cast %90 : vector<16x32xbf16> to vector<1x16x32xbf16>
      tpu.vector_store %arg6[%c0_72, %c0_73, %c0_74], %93 {strides = array<i32>} : memref<2x64x32xbf16, #tpu.memory_space<vmem>>, vector<1x16x32xbf16>,
      %c0_75 = arith.constant 0 : index
      %c32_76 = arith.constant 32 : index
      %94 = vector.load %arg2[%c0_75, %c32_76] : memref<16x256xbf16, #tpu.memory_space<vmem>>, vector<16x32xbf16>
      %95 = arith.extf %94 : vector<16x32xbf16> to vector<16x32xf32>
      %cst_77 = arith.constant 0.176776692 : f32
      %96 = vector.broadcast %cst_77 : f32 to vector<16x32xf32>
      %97 = arith.mulf %95, %96 : vector<16x32xf32>
      %98 = arith.truncf %97 : vector<16x32xf32> to vector<16x32xbf16>
      %c0_78 = arith.constant 0 : index
      %c16 = arith.constant 16 : index
      %c0_79 = arith.constant 0 : index
      %99 = vector.load %arg6[%c0_78, %c16, %c0_79] : memref<2x64x32xbf16, #tpu.memory_space<vmem>>, vector<1x16x32xbf16>
      %100 = vector.shape_cast %99 : vector<1x16x32xbf16> to vector<16x32xbf16>
      %101 = vector.shape_cast %98 : vector<16x32xbf16> to vector<1x16x32xbf16>
      tpu.vector_store %arg6[%c0_78, %c16, %c0_79], %101 {strides = array<i32>} : memref<2x64x32xbf16, #tpu.memory_space<vmem>>, vector<1x16x32xbf16>,
      %c0_80 = arith.constant 0 : index
      %c64 = arith.constant 64 : index
      %102 = vector.load %arg2[%c0_80, %c64] : memref<16x256xbf16, #tpu.memory_space<vmem>>, vector<16x32xbf16>
      %103 = arith.extf %102 : vector<16x32xbf16> to vector<16x32xf32>
      %cst_81 = arith.constant 0.176776692 : f32
      %104 = vector.broadcast %cst_81 : f32 to vector<16x32xf32>
      %105 = arith.mulf %103, %104 : vector<16x32xf32>
      %106 = arith.truncf %105 : vector<16x32xf32> to vector<16x32xbf16>
      %c0_82 = arith.constant 0 : index
      %c32_83 = arith.constant 32 : index
      %c0_84 = arith.constant 0 : index
      %107 = vector.load %arg6[%c0_82, %c32_83, %c0_84] : memref<2x64x32xbf16, #tpu.memory_space<vmem>>, vector<1x16x32xbf16>
      %108 = vector.shape_cast %107 : vector<1x16x32xbf16> to vector<16x32xbf16>
      %109 = vector.shape_cast %106 : vector<16x32xbf16> to vector<1x16x32xbf16>
      tpu.vector_store %arg6[%c0_82, %c32_83, %c0_84], %109 {strides = array<i32>} : memref<2x64x32xbf16, #tpu.memory_space<vmem>>, vector<1x16x32xbf16>,
      %c0_85 = arith.constant 0 : index
      %c96 = arith.constant 96 : index
      %110 = vector.load %arg2[%c0_85, %c96] : memref<16x256xbf16, #tpu.memory_space<vmem>>, vector<16x32xbf16>
      %111 = arith.extf %110 : vector<16x32xbf16> to vector<16x32xf32>
      %cst_86 = arith.constant 0.176776692 : f32
      %112 = vector.broadcast %cst_86 : f32 to vector<16x32xf32>
      %113 = arith.mulf %111, %112 : vector<16x32xf32>
      %114 = arith.truncf %113 : vector<16x32xf32> to vector<16x32xbf16>
      %c0_87 = arith.constant 0 : index
      %c48 = arith.constant 48 : index
      %c0_88 = arith.constant 0 : index
      %115 = vector.load %arg6[%c0_87, %c48, %c0_88] : memref<2x64x32xbf16, #tpu.memory_space<vmem>>, vector<1x16x32xbf16>
      %116 = vector.shape_cast %115 : vector<1x16x32xbf16> to vector<16x32xbf16>
      %117 = vector.shape_cast %114 : vector<16x32xbf16> to vector<1x16x32xbf16>
      tpu.vector_store %arg6[%c0_87, %c48, %c0_88], %117 {strides = array<i32>} : memref<2x64x32xbf16, #tpu.memory_space<vmem>>, vector<1x16x32xbf16>,
      %c0_89 = arith.constant 0 : index
      %c128 = arith.constant 128 : index
      %118 = vector.load %arg2[%c0_89, %c128] : memref<16x256xbf16, #tpu.memory_space<vmem>>, vector<16x32xbf16>
      %119 = arith.extf %118 : vector<16x32xbf16> to vector<16x32xf32>
      %cst_90 = arith.constant 0.176776692 : f32
      %120 = vector.broadcast %cst_90 : f32 to vector<16x32xf32>
      %121 = arith.mulf %119, %120 : vector<16x32xf32>
      %122 = arith.truncf %121 : vector<16x32xf32> to vector<16x32xbf16>
      %c1_91 = arith.constant 1 : index
      %c0_92 = arith.constant 0 : index
      %c0_93 = arith.constant 0 : index
      %123 = vector.load %arg6[%c1_91, %c0_92, %c0_93] : memref<2x64x32xbf16, #tpu.memory_space<vmem>>, vector<1x16x32xbf16>
      %124 = vector.shape_cast %123 : vector<1x16x32xbf16> to vector<16x32xbf16>
      %125 = vector.shape_cast %122 : vector<16x32xbf16> to vector<1x16x32xbf16>
      tpu.vector_store %arg6[%c1_91, %c0_92, %c0_93], %125 {strides = array<i32>} : memref<2x64x32xbf16, #tpu.memory_space<vmem>>, vector<1x16x32xbf16>,
      %c0_94 = arith.constant 0 : index
      %c160 = arith.constant 160 : index
      %126 = vector.load %arg2[%c0_94, %c160] : memref<16x256xbf16, #tpu.memory_space<vmem>>, vector<16x32xbf16>
      %127 = arith.extf %126 : vector<16x32xbf16> to vector<16x32xf32>
      %cst_95 = arith.constant 0.176776692 : f32
      %128 = vector.broadcast %cst_95 : f32 to vector<16x32xf32>
      %129 = arith.mulf %127, %128 : vector<16x32xf32>
      %130 = arith.truncf %129 : vector<16x32xf32> to vector<16x32xbf16>
      %c1_96 = arith.constant 1 : index
      %c16_97 = arith.constant 16 : index
      %c0_98 = arith.constant 0 : index
      %131 = vector.load %arg6[%c1_96, %c16_97, %c0_98] : memref<2x64x32xbf16, #tpu.memory_space<vmem>>, vector<1x16x32xbf16>
      %132 = vector.shape_cast %131 : vector<1x16x32xbf16> to vector<16x32xbf16>
      %133 = vector.shape_cast %130 : vector<16x32xbf16> to vector<1x16x32xbf16>
      tpu.vector_store %arg6[%c1_96, %c16_97, %c0_98], %133 {strides = array<i32>} : memref<2x64x32xbf16, #tpu.memory_space<vmem>>, vector<1x16x32xbf16>,
      %c0_99 = arith.constant 0 : index
      %c192 = arith.constant 192 : index
      %134 = vector.load %arg2[%c0_99, %c192] : memref<16x256xbf16, #tpu.memory_space<vmem>>, vector<16x32xbf16>
      %135 = arith.extf %134 : vector<16x32xbf16> to vector<16x32xf32>
      %cst_100 = arith.constant 0.176776692 : f32
      %136 = vector.broadcast %cst_100 : f32 to vector<16x32xf32>
      %137 = arith.mulf %135, %136 : vector<16x32xf32>
      %138 = arith.truncf %137 : vector<16x32xf32> to vector<16x32xbf16>
      %c1_101 = arith.constant 1 : index
      %c32_102 = arith.constant 32 : index
      %c0_103 = arith.constant 0 : index
      %139 = vector.load %arg6[%c1_101, %c32_102, %c0_103] : memref<2x64x32xbf16, #tpu.memory_space<vmem>>, vector<1x16x32xbf16>
      %140 = vector.shape_cast %139 : vector<1x16x32xbf16> to vector<16x32xbf16>
      %141 = vector.shape_cast %138 : vector<16x32xbf16> to vector<1x16x32xbf16>
      tpu.vector_store %arg6[%c1_101, %c32_102, %c0_103], %141 {strides = array<i32>} : memref<2x64x32xbf16, #tpu.memory_space<vmem>>, vector<1x16x32xbf16>,
      %c0_104 = arith.constant 0 : index
      %c224 = arith.constant 224 : index
      %142 = vector.load %arg2[%c0_104, %c224] : memref<16x256xbf16, #tpu.memory_space<vmem>>, vector<16x32xbf16>
      %143 = arith.extf %142 : vector<16x32xbf16> to vector<16x32xf32>
      %cst_105 = arith.constant 0.176776692 : f32
      %144 = vector.broadcast %cst_105 : f32 to vector<16x32xf32>
      %145 = arith.mulf %143, %144 : vector<16x32xf32>
      %146 = arith.truncf %145 : vector<16x32xf32> to vector<16x32xbf16>
      %c1_106 = arith.constant 1 : index
      %c48_107 = arith.constant 48 : index
      %c0_108 = arith.constant 0 : index
      %147 = vector.load %arg6[%c1_106, %c48_107, %c0_108] : memref<2x64x32xbf16, #tpu.memory_space<vmem>>, vector<1x16x32xbf16>
      %148 = vector.shape_cast %147 : vector<1x16x32xbf16> to vector<16x32xbf16>
      %149 = vector.shape_cast %146 : vector<16x32xbf16> to vector<1x16x32xbf16>
      tpu.vector_store %arg6[%c1_106, %c48_107, %c0_108], %149 {strides = array<i32>} : memref<2x64x32xbf16, #tpu.memory_space<vmem>>, vector<1x16x32xbf16>,
    } else {
    }
    %c0 = arith.constant 0 : index
    %c0_1 = arith.constant 0 : index
    %3 = vector.load %arg3[%c0, %c0_1] : memref<16x64xbf16, #tpu.memory_space<vmem>>, vector<16x32xbf16>
    %c0_2 = arith.constant 0 : index
    %c0_3 = arith.constant 0 : index
    %4 = vector.load %arg4[%c0_2, %c0_3] : memref<16x64xbf16, #tpu.memory_space<vmem>>, vector<16x32xbf16>
    %c0_4 = arith.constant 0 : index
    %c0_5 = arith.constant 0 : index
    %c0_6 = arith.constant 0 : index
    %5 = vector.load %arg6[%c0_4, %c0_5, %c0_6] : memref<2x64x32xbf16, #tpu.memory_space<vmem>>, vector<1x64x32xbf16>
    %6 = vector.shape_cast %5 : vector<1x64x32xbf16> to vector<64x32xbf16>
    %cst_7 = arith.constant dense<0.000000e+00> : vector<64x16xf32>
    %7 = tpu.matmul %6, %3, %cst_7 {dimension_numbers = #tpu.dot_dimension_numbers<[1], [1], [0], [0], [0, 0, 1, 0], [], []>} : vector<64x32xbf16>, vector<16x32xbf16>, vector<64x16xf32> -> vector<64x16xf32>
    %c0_8 = arith.constant 0 : index
    %c0_9 = arith.constant 0 : index
    %c0_10 = arith.constant 0 : index
    %8 = vector.load %arg7[%c0_8, %c0_9, %c0_10] : memref<2x64x1xf32, #tpu.memory_space<vmem>>, vector<1x64x1xf32>
    %9 = vector.shape_cast %8 : vector<1x64x1xf32> to vector<64x1xf32>
    %cst_11 = arith.constant dense<0xFF800000> : vector<64xf32>
    %10 = vector.multi_reduction <maximumf>, %7, %cst_11 [1] : vector<64x16xf32> to vector<64xf32>
    %11 = vector.shape_cast %10 : vector<64xf32> to vector<64x1xf32>
    %12 = arith.maximumf %9, %11 : vector<64x1xf32>
    %13 = arith.subf %9, %12 : vector<64x1xf32>
    %14 = math.exp %13 : vector<64x1xf32>
    %15 = vector.broadcast %12 : vector<64x1xf32> to vector<64x16xf32>
    %16 = arith.subf %7, %15 : vector<64x16xf32>
    %17 = math.exp %16 : vector<64x16xf32>
    %c0_12 = arith.constant 0 : index
    %c0_13 = arith.constant 0 : index
    %c0_14 = arith.constant 0 : index
    %18 = vector.load %arg8[%c0_12, %c0_13, %c0_14] : memref<2x64x1xf32, #tpu.memory_space<vmem>>, vector<1x64x1xf32>
    %19 = vector.shape_cast %18 : vector<1x64x1xf32> to vector<64x1xf32>
    %20 = arith.mulf %14, %19 : vector<64x1xf32>
    %cst_15 = arith.constant dense<0.000000e+00> : vector<64xf32>
    %21 = vector.multi_reduction <add>, %17, %cst_15 [1] : vector<64x16xf32> to vector<64xf32>
    %22 = vector.shape_cast %21 : vector<64xf32> to vector<64x1xf32>
    %23 = arith.addf %20, %22 : vector<64x1xf32>
    %c0_16 = arith.constant 0 : index
    %c0_17 = arith.constant 0 : index
    %c0_18 = arith.constant 0 : index
    %24 = vector.load %arg8[%c0_16, %c0_17, %c0_18] : memref<2x64x1xf32, #tpu.memory_space<vmem>>, vector<1x64x1xf32>
    %25 = vector.shape_cast %24 : vector<1x64x1xf32> to vector<64x1xf32>
    %26 = vector.shape_cast %23 : vector<64x1xf32> to vector<1x64x1xf32>
    tpu.vector_store %arg8[%c0_16, %c0_17, %c0_18], %26 {strides = array<i32>} : memref<2x64x1xf32, #tpu.memory_space<vmem>>, vector<1x64x1xf32>,
    %27 = arith.truncf %17 : vector<64x16xf32> to vector<64x16xbf16>
    %cst_19 = arith.constant dense<0.000000e+00> : vector<64x32xf32>
    %28 = tpu.matmul %27, %4, %cst_19 {dimension_numbers = #tpu.dot_dimension_numbers<[1], [0], [0], [1], [0, 0, 1, 1], [], []>} : vector<64x16xbf16>, vector<16x32xbf16>, vector<64x32xf32> -> vector<64x32xf32>
    %c0_20 = arith.constant 0 : index
    %c0_21 = arith.constant 0 : index
    %c0_22 = arith.constant 0 : index
    %29 = vector.load %arg9[%c0_20, %c0_21, %c0_22] : memref<2x64x32xf32, #tpu.memory_space<vmem>>, vector<1x64x32xf32>
    %30 = vector.shape_cast %29 : vector<1x64x32xf32> to vector<64x32xf32>
    %31 = vector.broadcast %14 : vector<64x1xf32> to vector<64x32xf32>
    %32 = arith.mulf %31, %30 : vector<64x32xf32>
    %33 = arith.addf %32, %28 : vector<64x32xf32>
    %c0_23 = arith.constant 0 : index
    %c0_24 = arith.constant 0 : index
    %c0_25 = arith.constant 0 : index
    %34 = vector.load %arg9[%c0_23, %c0_24, %c0_25] : memref<2x64x32xf32, #tpu.memory_space<vmem>>, vector<1x64x32xf32>
    %35 = vector.shape_cast %34 : vector<1x64x32xf32> to vector<64x32xf32>
    %36 = vector.shape_cast %33 : vector<64x32xf32> to vector<1x64x32xf32>
    tpu.vector_store %arg9[%c0_23, %c0_24, %c0_25], %36 {strides = array<i32>} : memref<2x64x32xf32, #tpu.memory_space<vmem>>, vector<1x64x32xf32>,
    %c0_26 = arith.constant 0 : index
    %c0_27 = arith.constant 0 : index
    %c0_28 = arith.constant 0 : index
    %37 = vector.load %arg7[%c0_26, %c0_27, %c0_28] : memref<2x64x1xf32, #tpu.memory_space<vmem>>, vector<1x64x1xf32>
    %38 = vector.shape_cast %37 : vector<1x64x1xf32> to vector<64x1xf32>
    %39 = vector.shape_cast %12 : vector<64x1xf32> to vector<1x64x1xf32>
    tpu.vector_store %arg7[%c0_26, %c0_27, %c0_28], %39 {strides = array<i32>} : memref<2x64x1xf32, #tpu.memory_space<vmem>>, vector<1x64x1xf32>,
    %c0_29 = arith.constant 0 : index
    %c32 = arith.constant 32 : index
    %40 = vector.load %arg3[%c0_29, %c32] : memref<16x64xbf16, #tpu.memory_space<vmem>>, vector<16x32xbf16>
    %c0_30 = arith.constant 0 : index
    %c32_31 = arith.constant 32 : index
    %41 = vector.load %arg4[%c0_30, %c32_31] : memref<16x64xbf16, #tpu.memory_space<vmem>>, vector<16x32xbf16>
    %c1 = arith.constant 1 : index
    %c0_32 = arith.constant 0 : index
    %c0_33 = arith.constant 0 : index
    %42 = vector.load %arg6[%c1, %c0_32, %c0_33] : memref<2x64x32xbf16, #tpu.memory_space<vmem>>, vector<1x64x32xbf16>
    %43 = vector.shape_cast %42 : vector<1x64x32xbf16> to vector<64x32xbf16>
    %cst_34 = arith.constant dense<0.000000e+00> : vector<64x16xf32>
    %44 = tpu.matmul %43, %40, %cst_34 {dimension_numbers = #tpu.dot_dimension_numbers<[1], [1], [0], [0], [0, 0, 1, 0], [], []>} : vector<64x32xbf16>, vector<16x32xbf16>, vector<64x16xf32> -> vector<64x16xf32>
    %c1_35 = arith.constant 1 : index
    %c0_36 = arith.constant 0 : index
    %c0_37 = arith.constant 0 : index
    %45 = vector.load %arg7[%c1_35, %c0_36, %c0_37] : memref<2x64x1xf32, #tpu.memory_space<vmem>>, vector<1x64x1xf32>
    %46 = vector.shape_cast %45 : vector<1x64x1xf32> to vector<64x1xf32>
    %cst_38 = arith.constant dense<0xFF800000> : vector<64xf32>
    %47 = vector.multi_reduction <maximumf>, %44, %cst_38 [1] : vector<64x16xf32> to vector<64xf32>
    %48 = vector.shape_cast %47 : vector<64xf32> to vector<64x1xf32>
    %49 = arith.maximumf %46, %48 : vector<64x1xf32>
    %50 = arith.subf %46, %49 : vector<64x1xf32>
    %51 = math.exp %50 : vector<64x1xf32>
    %52 = vector.broadcast %49 : vector<64x1xf32> to vector<64x16xf32>
    %53 = arith.subf %44, %52 : vector<64x16xf32>
    %54 = math.exp %53 : vector<64x16xf32>
    %c1_39 = arith.constant 1 : index
    %c0_40 = arith.constant 0 : index
    %c0_41 = arith.constant 0 : index
    %55 = vector.load %arg8[%c1_39, %c0_40, %c0_41] : memref<2x64x1xf32, #tpu.memory_space<vmem>>, vector<1x64x1xf32>
    %56 = vector.shape_cast %55 : vector<1x64x1xf32> to vector<64x1xf32>
    %57 = arith.mulf %51, %56 : vector<64x1xf32>
    %cst_42 = arith.constant dense<0.000000e+00> : vector<64xf32>
    %58 = vector.multi_reduction <add>, %54, %cst_42 [1] : vector<64x16xf32> to vector<64xf32>
    %59 = vector.shape_cast %58 : vector<64xf32> to vector<64x1xf32>
    %60 = arith.addf %57, %59 : vector<64x1xf32>
    %c1_43 = arith.constant 1 : index
    %c0_44 = arith.constant 0 : index
    %c0_45 = arith.constant 0 : index
    %61 = vector.load %arg8[%c1_43, %c0_44, %c0_45] : memref<2x64x1xf32, #tpu.memory_space<vmem>>, vector<1x64x1xf32>
    %62 = vector.shape_cast %61 : vector<1x64x1xf32> to vector<64x1xf32>
    %63 = vector.shape_cast %60 : vector<64x1xf32> to vector<1x64x1xf32>
    tpu.vector_store %arg8[%c1_43, %c0_44, %c0_45], %63 {strides = array<i32>} : memref<2x64x1xf32, #tpu.memory_space<vmem>>, vector<1x64x1xf32>,
    %64 = arith.truncf %54 : vector<64x16xf32> to vector<64x16xbf16>
    %cst_46 = arith.constant dense<0.000000e+00> : vector<64x32xf32>
    %65 = tpu.matmul %64, %41, %cst_46 {dimension_numbers = #tpu.dot_dimension_numbers<[1], [0], [0], [1], [0, 0, 1, 1], [], []>} : vector<64x16xbf16>, vector<16x32xbf16>, vector<64x32xf32> -> vector<64x32xf32>
    %c1_47 = arith.constant 1 : index
    %c0_48 = arith.constant 0 : index
    %c0_49 = arith.constant 0 : index
    %66 = vector.load %arg9[%c1_47, %c0_48, %c0_49] : memref<2x64x32xf32, #tpu.memory_space<vmem>>, vector<1x64x32xf32>
    %67 = vector.shape_cast %66 : vector<1x64x32xf32> to vector<64x32xf32>
    %68 = vector.broadcast %51 : vector<64x1xf32> to vector<64x32xf32>
    %69 = arith.mulf %68, %67 : vector<64x32xf32>
    %70 = arith.addf %69, %65 : vector<64x32xf32>
    %c1_50 = arith.constant 1 : index
    %c0_51 = arith.constant 0 : index
    %c0_52 = arith.constant 0 : index
    %71 = vector.load %arg9[%c1_50, %c0_51, %c0_52] : memref<2x64x32xf32, #tpu.memory_space<vmem>>, vector<1x64x32xf32>
    %72 = vector.shape_cast %71 : vector<1x64x32xf32> to vector<64x32xf32>
    %73 = vector.shape_cast %70 : vector<64x32xf32> to vector<1x64x32xf32>
    tpu.vector_store %arg9[%c1_50, %c0_51, %c0_52], %73 {strides = array<i32>} : memref<2x64x32xf32, #tpu.memory_space<vmem>>, vector<1x64x32xf32>,
    %c1_53 = arith.constant 1 : index
    %c0_54 = arith.constant 0 : index
    %c0_55 = arith.constant 0 : index
    %74 = vector.load %arg7[%c1_53, %c0_54, %c0_55] : memref<2x64x1xf32, #tpu.memory_space<vmem>>, vector<1x64x1xf32>
    %75 = vector.shape_cast %74 : vector<1x64x1xf32> to vector<64x1xf32>
    %76 = vector.shape_cast %49 : vector<64x1xf32> to vector<1x64x1xf32>
    tpu.vector_store %arg7[%c1_53, %c0_54, %c0_55], %76 {strides = array<i32>} : memref<2x64x1xf32, #tpu.memory_space<vmem>>, vector<1x64x1xf32>,
    %c0_i32_56 = arith.constant 0 : i32
    %77 = arith.cmpi eq, %arg1, %c0_i32_56 : i32
    %78 = arith.extui %77 : i1 to i32
    %c0_i32_57 = arith.constant 0 : i32
    %79 = arith.cmpi ne, %78, %c0_i32_57 : i32
    scf.if %79 {
      %c0_58 = arith.constant 0 : index
      %c0_59 = arith.constant 0 : index
      %c0_60 = arith.constant 0 : index
      %80 = vector.load %arg9[%c0_58, %c0_59, %c0_60] : memref<2x64x32xf32, #tpu.memory_space<vmem>>, vector<1x64x32xf32>
      %81 = vector.shape_cast %80 : vector<1x64x32xf32> to vector<64x32xf32>
      %c0_61 = arith.constant 0 : index
      %c0_62 = arith.constant 0 : index
      %c0_63 = arith.constant 0 : index
      %82 = vector.load %arg8[%c0_61, %c0_62, %c0_63] : memref<2x64x1xf32, #tpu.memory_space<vmem>>, vector<1x64x1xf32>
      %83 = vector.shape_cast %82 : vector<1x64x1xf32> to vector<64x1xf32>
      %84 = tpu.reciprocal %83 {approx = true} : vector<64x1xf32> -> vector<64x1xf32>
      %85 = vector.broadcast %84 : vector<64x1xf32> to vector<64x32xf32>
      %86 = arith.mulf %81, %85 : vector<64x32xf32>
      %87 = vector.extract_strided_slice %86 {offsets = [0, 0], sizes = [16, 32], strides = [1, 1]} : vector<64x32xf32> to vector<16x32xf32>
      %88 = arith.truncf %87 : vector<16x32xf32> to vector<16x32xbf16>
      %c0_64 = arith.constant 0 : index
      %c0_65 = arith.constant 0 : index
      %89 = vector.load %arg5[%c0_64, %c0_65] : memref<16x256xbf16, #tpu.memory_space<vmem>>, vector<16x32xbf16>
      tpu.vector_store %arg5[%c0_64, %c0_65], %88 {strides = array<i32>} : memref<16x256xbf16, #tpu.memory_space<vmem>>, vector<16x32xbf16>,
      %90 = vector.extract_strided_slice %86 {offsets = [16, 0], sizes = [16, 32], strides = [1, 1]} : vector<64x32xf32> to vector<16x32xf32>
      %91 = arith.truncf %90 : vector<16x32xf32> to vector<16x32xbf16>
      %c0_66 = arith.constant 0 : index
      %c32_67 = arith.constant 32 : index
      %92 = vector.load %arg5[%c0_66, %c32_67] : memref<16x256xbf16, #tpu.memory_space<vmem>>, vector<16x32xbf16>
      tpu.vector_store %arg5[%c0_66, %c32_67], %91 {strides = array<i32>} : memref<16x256xbf16, #tpu.memory_space<vmem>>, vector<16x32xbf16>,
      %93 = vector.extract_strided_slice %86 {offsets = [32, 0], sizes = [16, 32], strides = [1, 1]} : vector<64x32xf32> to vector<16x32xf32>
      %94 = arith.truncf %93 : vector<16x32xf32> to vector<16x32xbf16>
      %c0_68 = arith.constant 0 : index
      %c64 = arith.constant 64 : index
      %95 = vector.load %arg5[%c0_68, %c64] : memref<16x256xbf16, #tpu.memory_space<vmem>>, vector<16x32xbf16>
      tpu.vector_store %arg5[%c0_68, %c64], %94 {strides = array<i32>} : memref<16x256xbf16, #tpu.memory_space<vmem>>, vector<16x32xbf16>,
      %96 = vector.extract_strided_slice %86 {offsets = [48, 0], sizes = [16, 32], strides = [1, 1]} : vector<64x32xf32> to vector<16x32xf32>
      %97 = arith.truncf %96 : vector<16x32xf32> to vector<16x32xbf16>
      %c0_69 = arith.constant 0 : index
      %c96 = arith.constant 96 : index
      %98 = vector.load %arg5[%c0_69, %c96] : memref<16x256xbf16, #tpu.memory_space<vmem>>, vector<16x32xbf16>
      tpu.vector_store %arg5[%c0_69, %c96], %97 {strides = array<i32>} : memref<16x256xbf16, #tpu.memory_space<vmem>>, vector<16x32xbf16>,
      %c1_70 = arith.constant 1 : index
      %c0_71 = arith.constant 0 : index
      %c0_72 = arith.constant 0 : index
      %99 = vector.load %arg9[%c1_70, %c0_71, %c0_72] : memref<2x64x32xf32, #tpu.memory_space<vmem>>, vector<1x64x32xf32>
      %100 = vector.shape_cast %99 : vector<1x64x32xf32> to vector<64x32xf32>
      %c1_73 = arith.constant 1 : index
      %c0_74 = arith.constant 0 : index
      %c0_75 = arith.constant 0 : index
      %101 = vector.load %arg8[%c1_73, %c0_74, %c0_75] : memref<2x64x1xf32, #tpu.memory_space<vmem>>, vector<1x64x1xf32>
      %102 = vector.shape_cast %101 : vector<1x64x1xf32> to vector<64x1xf32>
      %103 = tpu.reciprocal %102 {approx = true} : vector<64x1xf32> -> vector<64x1xf32>
      %104 = vector.broadcast %103 : vector<64x1xf32> to vector<64x32xf32>
      %105 = arith.mulf %100, %104 : vector<64x32xf32>
      %106 = vector.extract_strided_slice %105 {offsets = [0, 0], sizes = [16, 32], strides = [1, 1]} : vector<64x32xf32> to vector<16x32xf32>
      %107 = arith.truncf %106 : vector<16x32xf32> to vector<16x32xbf16>
      %c0_76 = arith.constant 0 : index
      %c128 = arith.constant 128 : index
      %108 = vector.load %arg5[%c0_76, %c128] : memref<16x256xbf16, #tpu.memory_space<vmem>>, vector<16x32xbf16>
      tpu.vector_store %arg5[%c0_76, %c128], %107 {strides = array<i32>} : memref<16x256xbf16, #tpu.memory_space<vmem>>, vector<16x32xbf16>,
      %109 = vector.extract_strided_slice %105 {offsets = [16, 0], sizes = [16, 32], strides = [1, 1]} : vector<64x32xf32> to vector<16x32xf32>
      %110 = arith.truncf %109 : vector<16x32xf32> to vector<16x32xbf16>
      %c0_77 = arith.constant 0 : index
      %c160 = arith.constant 160 : index
      %111 = vector.load %arg5[%c0_77, %c160] : memref<16x256xbf16, #tpu.memory_space<vmem>>, vector<16x32xbf16>
      tpu.vector_store %arg5[%c0_77, %c160], %110 {strides = array<i32>} : memref<16x256xbf16, #tpu.memory_space<vmem>>, vector<16x32xbf16>,
      %112 = vector.extract_strided_slice %105 {offsets = [32, 0], sizes = [16, 32], strides = [1, 1]} : vector<64x32xf32> to vector<16x32xf32>
      %113 = arith.truncf %112 : vector<16x32xf32> to vector<16x32xbf16>
      %c0_78 = arith.constant 0 : index
      %c192 = arith.constant 192 : index
      %114 = vector.load %arg5[%c0_78, %c192] : memref<16x256xbf16, #tpu.memory_space<vmem>>, vector<16x32xbf16>
      tpu.vector_store %arg5[%c0_78, %c192], %113 {strides = array<i32>} : memref<16x256xbf16, #tpu.memory_space<vmem>>, vector<16x32xbf16>,
      %115 = vector.extract_strided_slice %105 {offsets = [48, 0], sizes = [16, 32], strides = [1, 1]} : vector<64x32xf32> to vector<16x32xf32>
      %116 = arith.truncf %115 : vector<16x32xf32> to vector<16x32xbf16>
      %c0_79 = arith.constant 0 : index
      %c224 = arith.constant 224 : index
      %117 = vector.load %arg5[%c0_79, %c224] : memref<16x256xbf16, #tpu.memory_space<vmem>>, vector<16x32xbf16>
      tpu.vector_store %arg5[%c0_79, %c224], %116 {strides = array<i32>} : memref<16x256xbf16, #tpu.memory_space<vmem>>, vector<16x32xbf16>,
    } else {
    }
    return
  }
  func.func @transform_0(%arg0: i32, %arg1: i32) -> (i32, i32) {
    %c0_i32 = arith.constant 0 : i32
    %c0_i32_0 = arith.constant 0 : i32
    return %arg0, %c0_i32 : i32, i32
  }
  func.func @transform_1(%arg0: i32, %arg1: i32) -> (i32, i32) {
    %c0_i32 = arith.constant 0 : i32
    %c0_i32_0 = arith.constant 0 : i32
    return %arg1, %c0_i32 : i32, i32
  }
  func.func @transform_2(%arg0: i32, %arg1: i32) -> (i32, i32) {
    %c0_i32 = arith.constant 0 : i32
    %c0_i32_0 = arith.constant 0 : i32
    return %arg1, %c0_i32 : i32, i32
  }
  func.func @transform_3(%arg0: i32, %arg1: i32) -> (i32, i32) {
    %c0_i32 = arith.constant 0 : i32
    %c0_i32_0 = arith.constant 0 : i32
    return %arg0, %c0_i32 : i32, i32
  }
}

</mosaic_0001>

<bundles_post_ra>
// kernel: tpu_custom_call.1
= control target key start
LH: loop header
LB: loop body
LE: loop exit
PB: predicated region body
PF: predicated region fallthrough
CT: control target
= control target key end

     0   :  { %8 = vsyncpa [#allocation7], 0  ;;  %s2356_s0 = inlined_call_operand.hbm [shape: bf16[16,256], index: 0, kind: input, shape index: {}]   ;;  %s2357_s1 = inlined_call_operand.hbm [shape: bf16[16,64], index: 1, kind: input, shape index: {}]   ;;  %s2358_s2 = inlined_call_operand.hbm [shape: bf16[16,64], index: 2, kind: input, shape index: {}]   ;;  %s2359_s3 = inlined_call_operand.hbm [shape: bf16[16,256], index: 3, kind: output, shape index: {}]  }
   0x1   :  { %9 = vsyncpa [#allocation10], 0 }
   0x2   :  { %10 = vsyncpa [#allocation8], 0  ;;  %s1695_s12 = smov [#allocation9]   ;;  %s1601_s16 = scalar_lea.hbm %s2357_s1, 128 }
   0x3   :  { %s28_s13 = sshll.u32 %s1695_s12, 4  ;;  %p1602_p0 = scmp.ne.s32.totalorder %s2357_s1, %s1601_s16  ;;  %s29_s13 = int_to_ptr.vmem [resolvable:$true] %s28_s13 }
   0x4   :  { %p1605_p1 = scmp.lt.u32.totalorder %s1601_s16, %s2357_s1 }
   0x6   :  { %p1607_p2 = pnand %p1605_p1, %p1602_p0 }
   0x8   :  { %1610 = shalt.err (!%p1607_p2)
}
   0x9   :  { %s1611_s21 = scalar_lea.vmem %s29_s13, 128  ;;  %p1616_p4 = scmp.lt.s32.totalorder %s29_s13, %s29_s13 }
   0xa   :  { %p1612_p3 = scmp.ne.s32.totalorder %s29_s13, %s1611_s21  ;;  %p1617_p5 = scmp.lt.s32.totalorder %s1611_s21, %s1611_s21 }
   0xc   :  { %p1618_p6 = por %p1617_p5, %p1616_p4 }
   0xe   :  { %p1619_p7 = pnand %p1618_p6, %p1612_p3 }
  0x10   :  { %1622 = shalt.err (!%p1619_p7)
}
  0x11   :  { %s1696_s22 = smov 64   ;;  %s1697_s23 = smov 4  }
  0x12   :  { %34 = dma.hbm_to_vmem [thread:$0]  %s2357_s1, 128, %s29_s13, [#allocation10], %s1696_s22, %s1696_s22, %s1697_s23  }
  0x13   :  { %s1698_s26 = smov [#allocation6]   ;;  %s1623_s30 = scalar_lea.hbm %s2356_s0, 256 }
  0x14   :  { %s16_s27 = sshll.u32 %s1698_s26, 4  ;;  %p1624_p8 = scmp.ne.s32.totalorder %s2356_s0, %s1623_s30  ;;  %s17_s27 = int_to_ptr.vmem [resolvable:$true] %s16_s27 }
  0x15   :  { %p1627_p9 = scmp.lt.u32.totalorder %s1623_s30, %s2356_s0 }
  0x17   :  { %p1629_p10 = pnand %p1627_p9, %p1624_p8 }
  0x19   :  { %1632 = shalt.err (!%p1629_p10)
}
  0x1a   :  { %s1633_s8 = scalar_lea.vmem %s17_s27, 256  ;;  %p1638_p12 = scmp.lt.s32.totalorder %s17_s27, %s17_s27 }
  0x1b   :  { %p1634_p11 = scmp.ne.s32.totalorder %s17_s27, %s1633_s8  ;;  %p1639_p13 = scmp.lt.s32.totalorder %s1633_s8, %s1633_s8 }
  0x1d   :  { %p1640_p0 = por %p1639_p13, %p1638_p12 }
  0x1f   :  { %p1641_p1 = pnand %p1640_p0, %p1634_p11 }
  0x21   :  { %1644 = shalt.err (!%p1641_p1)
}
  0x22   :  { %s1699_s1 = smov 128   ;;  %s1700_s9 = smov 8  }
  0x23   :  { %22 = dma.hbm_to_vmem [thread:$0]  %s2356_s0, 256, %s17_s27, [#allocation7], %s1699_s1, %s1699_s1, %s1700_s9  }
  0x24   :  { %s1701_s12 = smov [#allocation11]   ;;  %s1645_s16 = scalar_lea.hbm %s2358_s2, 128 }
  0x25   :  { %s40_s13 = sshll.u32 %s1701_s12, 4  ;;  %p1646_p2 = scmp.ne.s32.totalorder %s2358_s2, %s1645_s16  ;;  %s41_s13 = int_to_ptr.vmem [resolvable:$true] %s40_s13 }
  0x26   :  { %p1649_p3 = scmp.lt.u32.totalorder %s1645_s16, %s2358_s2 }
  0x28   :  { %p1651_p4 = pnand %p1649_p3, %p1646_p2 }
  0x2a   :  { %1654 = shalt.err (!%p1651_p4)
}
  0x2b   :  { %s1655_s21 = scalar_lea.vmem %s41_s13, 128  ;;  %p1660_p6 = scmp.lt.s32.totalorder %s41_s13, %s41_s13 }
  0x2c   :  { %p1656_p5 = scmp.ne.s32.totalorder %s41_s13, %s1655_s21  ;;  %p1661_p7 = scmp.lt.s32.totalorder %s1655_s21, %s1655_s21 }
  0x2e   :  { %p1662_p8 = por %p1661_p7, %p1660_p6 }
  0x30   :  { %p1663_p9 = pnand %p1662_p8, %p1656_p5 }
  0x32   :  { %1666 = shalt.err (!%p1663_p9)
}
  0x33   :  { %46 = dma.hbm_to_vmem [thread:$0]  %s2358_s2, 128, %s41_s13, [#allocation10], %s1696_s22, %s1696_s22, %s1697_s23  }
  0x34   :  { %1689 = dma.done.wait [#allocation7], 256  }
  0x35   :  { %1690 = vsyncadd [#allocation7], 4294967040 }
  0x36   :  { %1691 = dma.done.wait [#allocation10], 256  }
  0x37   :  { %1692 = vsyncadd [#allocation10], 4294967040  ;;  %v1773_v0 = vld [vmem:[#allocation6] sm:$0xff]   ;;  %v1775_v1 = vld [vmem:[#allocation6 + $0x8] sm:$0xff]   ;;  %vm94_vm0 = vcmask 261120   ;;  %s1702_s2 = smov 96  }
  0x38   :  { %v1777_v2 = vld [vmem:[#allocation6] sm:$0xff]   ;;  %v121_v3 = vunpack.c.l.bf16 %v1773_v0  ;;  %v122_v4 = vunpack.c.l.bf16 %v1775_v1  ;;  %v1781_v5 = vld [vmem:[#allocation6 + $0x8] sm:$0xff]   ;;  %v1501_v12 = vld [vmem:[#allocation9] sm:$0xff]   ;;  %s1703_s23 = smov 32   ;;  %vm61_vm1 = vcmask 7168   ;;  %vm302_vm2 = vcmask 130048  }
  0x39   :  { %v133_v6 = vunpack.c.l.bf16 %v1777_v2  ;;  %v1784_v7 = vld [vmem:[#allocation6] sm:$0xff]   ;;  %v1786_v8 = vld [vmem:[#allocation6 + $0x8] sm:$0xff]   ;;  %v134_v9 = vunpack.c.l.bf16 %v1781_v5  ;;  %1484 = vmatprep.subr.msk.bf16.mxu0 %vm94_vm0, %v1501_v12  ;;  %v227_v20 = vsel %vm94_vm0, %v1501_v12, 0  ;;  %v1704_v37 = vmov -1e+30  }
  0x3a   :  { %v145_v10 = vunpack.c.l.bf16 %v1784_v7  ;;  %v146_v11 = vunpack.c.l.bf16 %v1786_v8  ;;  %v123_v13 = vmul.f32 0.17677669, %v121_v3  ;;  %v124_v14 = vmul.f32 0.17677669, %v122_v4  ;;  %v1793_v21 = vld [vmem:[#allocation6] sm:$0xff]   ;;  %v1795_v22 = vld [vmem:[#allocation6 + $0x8] sm:$0xff]   ;;  %1445 = vmatpush3.bf16.xpose.msra.mxu0 %v227_v20 }
  0x3b   :  { %v135_v15 = vmul.f32 0.17677669, %v133_v6  ;;  %v136_v16 = vmul.f32 0.17677669, %v134_v9  ;;  %v113_v24 = vunpack.c.l.bf16 %v1793_v21  ;;  %v114_v25 = vunpack.c.l.bf16 %v1795_v22  ;;  %62 = vst.msk [vmem:[#allocation3] sm:$0xff] %vm61_vm1, %v1704_v37  ;;  %63 = vst.msk [vmem:[#allocation3 + $0x8] sm:$0xff] %vm61_vm1, %v1704_v37 }
  0x3c   :  { %v147_v17 = vmul.f32 0.17677669, %v145_v10  ;;  %v148_v18 = vmul.f32 0.17677669, %v146_v11  ;;  %v125_v19 = vpack.c.bf16 %v124_v14, %v123_v13  ;;  %64 = vst.msk [vmem:[#allocation3 + $0x10] sm:$0xff] %vm61_vm1, %v1704_v37  ;;  %65 = vst.msk [vmem:[#allocation3 + $0x18] sm:$0xff] %vm61_vm1, %v1704_v37  ;;  %v190_v57 = vunpack.c.h.bf16 %v1784_v7 }
  0x3d   :  { %v137_v26 = vpack.c.bf16 %v136_v16, %v135_v15  ;;  %v115_v27 = vmul.f32 0.17677669, %v113_v24  ;;  %v116_v28 = vmul.f32 0.17677669, %v114_v25  ;;  %66 = vst.msk [vmem:[#allocation3 + $0x20] sm:$0xff] %vm61_vm1, %v1704_v37  ;;  %67 = vst.msk [vmem:[#allocation3 + $0x28] sm:$0xff] %vm61_vm1, %v1704_v37  ;;  %v191_v58 = vunpack.c.h.bf16 %v1786_v8 }
  0x3e   :  { %v149_v23 = vpack.c.bf16 %v148_v18, %v147_v17  ;;  %127 = vrot.lane.b32.xlu0 %v125_v19, %s1702_s2  ;;  %68 = vst.msk [vmem:[#allocation3 + $0x30] sm:$0xff] %vm61_vm1, %v1704_v37  ;;  %69 = vst.msk [vmem:[#allocation3 + $0x38] sm:$0xff] %vm61_vm1, %v1704_v37  ;;  %v1705_v54 = vmov 0   ;;  %v1706_v55 = vmov 0.0   ;;  %v1502_v6 = vld [vmem:[#allocation9] sm:$0xff]   ;;  %vm1182_vm3 = vcmask 257024  }
  0x3f   :  { %v117_v29 = vpack.c.bf16 %v116_v28, %v115_v27  ;;  %70 = vst.msk [vmem:[#allocation3 + $0x40] sm:$0xff] %vm61_vm1, %v1704_v37  ;;  %71 = vst.msk [vmem:[#allocation3 + $0x48] sm:$0xff] %vm61_vm1, %v1704_v37  ;;  %1499 = vset.pattern.permute.xlu0 %v1705_v54  ;;  %1500 = vset.pattern.permute.xlu1 %v1705_v54  ;;  %v192_v7 = vmul.f32 0.17677669, %v190_v57  ;;  %v193_v8 = vmul.f32 0.17677669, %v191_v58  ;;  %v158_v54 = vunpack.c.h.bf16 %v1795_v22 }
  0x40   :  { %151 = vrot.lane.b32.xlu1 %v149_v23, %s1703_s23  ;;  %72 = vst.msk [vmem:[#allocation3 + $0x50] sm:$0xff] %vm61_vm1, %v1704_v37  ;;  %73 = vst.msk [vmem:[#allocation3 + $0x58] sm:$0xff] %vm61_vm1, %v1704_v37  ;;  %vm1197_vm4 = vcmask 519424   ;;  %vm1212_vm5 = vcmask 781824   ;;  %vm1227_vm6 = vcmask 1044224  }
  0x41   :  { %118 = vst.msk [vmem:[#allocation2] sm:$0xff] %vm94_vm0, %v117_v29  ;;  %95 = vst.msk [vmem:[#allocation5] sm:$0xff] %vm94_vm0, %v1706_v55  ;;  %v194_v16 = vpack.c.bf16 %v193_v8, %v192_v7 }
  0x42   :  { %139 = vrot.lane.b32.xlu0 %v137_v26, %s1696_s22  ;;  %74 = vst.msk [vmem:[#allocation3 + $0x60] sm:$0xff] %vm61_vm1, %v1704_v37  ;;  %75 = vst.msk [vmem:[#allocation3 + $0x68] sm:$0xff] %vm61_vm1, %v1704_v37  ;;  %v1890_v56 = vld [vmem:[#allocation3] sm:$0xff]  ;;  %v1894_v60 = vld [vmem:[#allocation3 + $0x8] sm:$0xff] }
  0x43   :  { %76 = vst.msk [vmem:[#allocation3 + $0x70] sm:$0xff] %vm61_vm1, %v1704_v37  ;;  %77 = vst.msk [vmem:[#allocation3 + $0x78] sm:$0xff] %vm61_vm1, %v1704_v37  ;;  %v1899_v63 = vld [vmem:[#allocation3 + $0x18] sm:$0xff]  ;;  %v1909_v10 = vld [vmem:[#allocation3 + $0x10] sm:$0xff]  ;;  %v167_v37 = vunpack.c.h.bf16 %v1775_v1  ;;  %v157_v1 = vunpack.c.h.bf16 %v1793_v21 }
  0x44   :  { %78 = vst.msk [vmem:[#allocation4] sm:$0xff] %vm61_vm1, %v1706_v55  ;;  %79 = vst.msk [vmem:[#allocation4 + $0x8] sm:$0xff] %vm61_vm1, %v1706_v55  ;;  %v1926_v17 = vld [vmem:[#allocation3 + $0x20] sm:$0xff]  ;;  %v1928_v18 = vld [vmem:[#allocation3 + $0x28] sm:$0xff] }
  0x45   :  { %80 = vst.msk [vmem:[#allocation4 + $0x10] sm:$0xff] %vm61_vm1, %v1706_v55  ;;  %81 = vst.msk [vmem:[#allocation4 + $0x18] sm:$0xff] %vm61_vm1, %v1706_v55  ;;  %v1942_v26 = vld [vmem:[#allocation3 + $0x30] sm:$0xff]  ;;  %v1944_v27 = vld [vmem:[#allocation3 + $0x38] sm:$0xff] }
  0x46   :  { %82 = vst.msk [vmem:[#allocation4 + $0x20] sm:$0xff] %vm61_vm1, %v1706_v55  ;;  %83 = vst.msk [vmem:[#allocation4 + $0x28] sm:$0xff] %vm61_vm1, %v1706_v55 }
  0x47   :  { %84 = vst.msk [vmem:[#allocation4 + $0x30] sm:$0xff] %vm61_vm1, %v1706_v55  ;;  %85 = vst.msk [vmem:[#allocation4 + $0x38] sm:$0xff] %vm61_vm1, %v1706_v55 }
  0x48   :  { %v204_v30 = vld [vmem:[#allocation2] sm:$0xff]  ;;  %86 = vst.msk [vmem:[#allocation4 + $0x40] sm:$0xff] %vm61_vm1, %v1706_v55  ;;  %87 = vst.msk [vmem:[#allocation4 + $0x48] sm:$0xff] %vm61_vm1, %v1706_v55 }
  0x49   :  { %1446 = vmatprep.mubr.msk.bf16.mxu0 %vm94_vm0, %v204_v30  ;;  %88 = vst.msk [vmem:[#allocation4 + $0x50] sm:$0xff] %vm61_vm1, %v1706_v55  ;;  %89 = vst.msk [vmem:[#allocation4 + $0x58] sm:$0xff] %vm61_vm1, %v1706_v55 }
  0x4a   :  { %90 = vst.msk [vmem:[#allocation4 + $0x60] sm:$0xff] %vm61_vm1, %v1706_v55  ;;  %91 = vst.msk [vmem:[#allocation4 + $0x68] sm:$0xff] %vm61_vm1, %v1706_v55 }
  0x4b   :  { %92 = vst.msk [vmem:[#allocation4 + $0x70] sm:$0xff] %vm61_vm1, %v1706_v55  ;;  %93 = vst.msk [vmem:[#allocation4 + $0x78] sm:$0xff] %vm61_vm1, %v1706_v55 }
  0x4c   :  { %96 = vst.msk [vmem:[#allocation5 + $0x8] sm:$0xff] %vm94_vm0, %v1706_v55  ;;  %97 = vst.msk [vmem:[#allocation5 + $0x10] sm:$0xff] %vm94_vm0, %v1706_v55 }
  0x4d   :  { %98 = vst.msk [vmem:[#allocation5 + $0x18] sm:$0xff] %vm94_vm0, %v1706_v55  ;;  %99 = vst.msk [vmem:[#allocation5 + $0x20] sm:$0xff] %vm94_vm0, %v1706_v55 }
  0x4e   :  { %100 = vst.msk [vmem:[#allocation5 + $0x28] sm:$0xff] %vm94_vm0, %v1706_v55  ;;  %101 = vst.msk [vmem:[#allocation5 + $0x30] sm:$0xff] %vm94_vm0, %v1706_v55 }
  0x4f   :  { %102 = vst.msk [vmem:[#allocation5 + $0x38] sm:$0xff] %vm94_vm0, %v1706_v55  ;;  %103 = vst.msk [vmem:[#allocation5 + $0x40] sm:$0xff] %vm94_vm0, %v1706_v55 }
  0x50   :  { %104 = vst.msk [vmem:[#allocation5 + $0x48] sm:$0xff] %vm94_vm0, %v1706_v55  ;;  %105 = vst.msk [vmem:[#allocation5 + $0x50] sm:$0xff] %vm94_vm0, %v1706_v55 }
  0x51   :  { %106 = vst.msk [vmem:[#allocation5 + $0x58] sm:$0xff] %vm94_vm0, %v1706_v55  ;;  %107 = vst.msk [vmem:[#allocation5 + $0x60] sm:$0xff] %vm94_vm0, %v1706_v55 }
  0x52   :  { %108 = vst.msk [vmem:[#allocation5 + $0x68] sm:$0xff] %vm94_vm0, %v1706_v55  ;;  %109 = vst.msk [vmem:[#allocation5 + $0x70] sm:$0xff] %vm94_vm0, %v1706_v55 }
  0x53   :  { %110 = vst.msk [vmem:[#allocation5 + $0x78] sm:$0xff] %vm94_vm0, %v1706_v55  ;;  %v160_v55 = vmul.f32 0.17677669, %v158_v54 }
  0xb0   :  { %v128_v31 = vpop.permute.xlu0 %127 }
  0xb1   :  { %130 = vst.msk [vmem:[#allocation2 + $0x8] sm:$0xff] %vm94_vm0, %v128_v31 }
  0xb2   :  { %v152_v32 = vpop.permute.xlu1 %151 }
  0xb3   :  { %154 = vst.msk [vmem:[#allocation2 + $0x18] sm:$0xff] %vm94_vm0, %v152_v32 }
  0xb4   :  { %v140_v33 = vpop.permute.xlu0 %139 }
  0xb5   :  { %142 = vst.msk [vmem:[#allocation2 + $0x10] sm:$0xff] %vm94_vm0, %v140_v33 }
  0xb8   :  { %v205_v34 = vld [vmem:[#allocation2 + $0x8] sm:$0xff] }
  0xb9   :  { %1447 = vmatmul.mubr.msk.bf16.vlgmr.msra.gmra.mrb[0].mxu0 %vm94_vm0, %v205_v34 }
  0xba   :  { %v207_v36 = vld [vmem:[#allocation2 + $0x18] sm:$0xff] }
  0xbc   :  { %v206_v35 = vld [vmem:[#allocation2 + $0x10] sm:$0xff] }
  0xbd   :  { %1450 = vmatprep.mubr.msk.bf16.mxu0 %vm94_vm0, %v206_v35  ;;  %v2126_v35 = vld [vmem:[#allocation3 + $0x78] sm:$0xff] }
  0xc1   :  { %1451 = vmatmul.mubr.msk.bf16.gmra.mrb[4].mxu0 %vm94_vm0, %v207_v36  ;;  %v166_v36 = vunpack.c.h.bf16 %v1773_v0 }
 0x18c   :  { %v1826_v38 = vpop.f32.mrb[0].mxu0 }
 0x18d   :  { %v1828_v39 = vpop.f32.mrb[1].mxu0  ;;  %v309_v46 = vsel %vm302_vm2, %v1826_v38, -inf }
 0x18e   :  { %v1830_v40 = vpop.f32.mrb[2].mxu0  ;;  %v303_v41 = vsel %vm302_vm2, %v1828_v39, -inf }
 0x18f   :  { %304 = vmax.xlane.f32.xlu1 %v303_v41  ;;  %v1834_v42 = vpop.f32.mrb[3].mxu0  ;;  %v312_v44 = vsel %vm302_vm2, %v1830_v40, -inf  ;;  %v168_v41 = vmul.f32 0.17677669, %v166_v36 }
 0x190   :  { %v306_v43 = vsel %vm302_vm2, %v1834_v42, -inf }
 0x191   :  { %307 = vmax.xlane.f32.xlu0 %v306_v43  ;;  %v169_v43 = vmul.f32 0.17677669, %v167_v37 }
 0x193   :  { %313 = vmax.xlane.f32.xlu1 %v312_v44  ;;  %v178_v44 = vunpack.c.h.bf16 %v1777_v2  ;;  %v159_v2 = vmul.f32 0.17677669, %v157_v1 }
 0x194   :  { %v1840_v45 = vpop.f32.mrb[4].mxu0 }
 0x195   :  { %310 = vmax.xlane.f32.xlu0 %v309_v46  ;;  %v1844_v47 = vpop.f32.mrb[5].mxu0  ;;  %v321_v52 = vsel %vm302_vm2, %v1840_v45, -inf  ;;  %v179_v46 = vunpack.c.h.bf16 %v1781_v5  ;;  %v161_v5 = vpack.c.bf16 %v160_v55, %v159_v2 }
 0x196   :  { %v1846_v48 = vpop.f32.mrb[6].mxu0  ;;  %v315_v49 = vsel %vm302_vm2, %v1844_v47, -inf }
 0x197   :  { %v1850_v50 = vpop.f32.mrb[7].mxu0  ;;  %v324_v53 = vsel %vm302_vm2, %v1846_v48, -inf  ;;  %163 = vst.msk [vmem:[#allocation2 + $0x20] sm:$0xff] %vm94_vm0, %v161_v5 }
 0x198   :  { %v318_v51 = vsel %vm302_vm2, %v1850_v50, -inf }
 0x199   :  { %316 = vmax.xlane.f32.xlu0 %v315_v49  ;;  %319 = vmax.xlane.f32.xlu1 %v318_v51  ;;  %v1503_v49 = vld [vmem:[#allocation11] sm:$0xff]   ;;  %v170_v51 = vpack.c.bf16 %v169_v43, %v168_v41 }
 0x19a   :  { %1454 = vmatprep.subr.bf16.mxu1 %v1503_v49 }
 0x19b   :  { %1455 = vmatpush3.bf16.msra.mxu1 %v1503_v49 }
 0x19d   :  { %322 = vmax.xlane.f32.xlu0 %v321_v52  ;;  %325 = vmax.xlane.f32.xlu1 %v324_v53  ;;  %v180_v52 = vmul.f32 0.17677669, %v178_v44  ;;  %v181_v53 = vmul.f32 0.17677669, %v179_v46 }
 0x19f   :  { %v182_v0 = vpack.c.bf16 %v181_v53, %v180_v52 }
 0x21c   :  { %v305_v59 = vpop.xlane.xlu1 %304 }
 0x21d   :  { %v1897_v61 = vmax.f32 %v1890_v56, %v305_v59 }
 0x21e   :  { %v308_v62 = vpop.xlane.xlu0 %307 }
 0x21f   :  { %v335_v3 = vsub.f32 %v1890_v56, %v1897_v61  ;;  %639 = vst.msk [vmem:[#allocation3] sm:$0xff] %vm61_vm1, %v1897_v61  ;;  %v1906_v4 = vmax.f32 %v1894_v60, %v308_v62  ;;  %361 = vperm.xlu0 %1499, %v1897_v61  }
 0x220   :  { %v314_v9 = vpop.xlane.xlu1 %313 }
 0x221   :  { %640 = vst.msk [vmem:[#allocation3 + $0x8] sm:$0xff] %vm61_vm1, %v1906_v4  ;;  %v1916_v12 = vmax.f32 %v1899_v63, %v314_v9 }
 0x222   :  { %v311_v13 = vpop.xlane.xlu0 %310 }
 0x223   :  { %642 = vst.msk [vmem:[#allocation3 + $0x18] sm:$0xff] %vm61_vm1, %v1916_v12  ;;  %v1923_v15 = vmax.f32 %v1909_v10, %v311_v13  ;;  %661 = vrot.lane.b32.xlu0 %v1502_v6, %s1702_s2 }
 0x225   :  { %641 = vst.msk [vmem:[#allocation3 + $0x10] sm:$0xff] %vm61_vm1, %v1923_v15  ;;  %371 = vperm.xlu1 %1500, %v1923_v15  }
 0x226   :  { %v317_v20 = vpop.xlane.xlu0 %316  ;;  %v320_v23 = vpop.xlane.xlu1 %319 }
 0x227   :  { %v1936_v24 = vmax.f32 %v1926_v17, %v317_v20  ;;  %v1939_v25 = vmax.f32 %v1928_v18, %v320_v23  ;;  %196 = vrot.lane.b32.xlu0 %v194_v16, %s1703_s23 }
 0x229   :  { %643 = vst.msk [vmem:[#allocation3 + $0x20] sm:$0xff] %vm61_vm1, %v1936_v24  ;;  %644 = vst.msk [vmem:[#allocation3 + $0x28] sm:$0xff] %vm61_vm1, %v1939_v25  ;;  %376 = vperm.xlu1 %1500, %v1916_v12   ;;  %v2363_v56 = vsub.f32 %v1926_v17, %v1936_v24 }
 0x22a   :  { %v323_v30 = vpop.xlane.xlu0 %322  ;;  %v326_v31 = vpop.xlane.xlu1 %325 }
 0x22b   :  { %v1956_v32 = vmax.f32 %v1942_v26, %v323_v30  ;;  %v1959_v33 = vmax.f32 %v1944_v27, %v326_v31  ;;  %v351_v61 = vmul.f32 1.442695, %v2363_v56 }
 0x22d   :  { %645 = vst.msk [vmem:[#allocation3 + $0x30] sm:$0xff] %vm61_vm1, %v1956_v32  ;;  %646 = vst.msk [vmem:[#allocation3 + $0x38] sm:$0xff] %vm61_vm1, %v1959_v33  ;;  %366 = vperm.xlu1 %1500, %v1906_v4  }
 0x231   :  { %391 = vperm.xlu1 %1500, %v1956_v32  }
 0x235   :  { %381 = vperm.xlu1 %1500, %v1936_v24  }
 0x239   :  { %386 = vperm.xlu1 %1500, %v1939_v25  }
 0x23d   :  { %396 = vperm.xlu1 %1500, %v1959_v33  }
 0x241   :  { %172 = vrot.lane.b32.xlu1 %v170_v51, %s1702_s2 }
 0x245   :  { %184 = vrot.lane.b32.xlu1 %v182_v0, %s1696_s22 }
 0x29e   :  { %v362_v57 = vpop.permute.xlu0 %361 }
 0x29f   :  { %v399_v7 = vsub.f32 %v1828_v39, %v362_v57 }
 0x2a1   :  { %v407_v13 = vmul.f32 1.442695, %v399_v7 }
 0x2a2   :  { %v662_v58 = vpop.permute.xlu0 %661 }
 0x2a3   :  { %1485 = vmatprep.subr.msk.bf16.mxu1 %vm94_vm0, %v662_v58  ;;  %v676_v53 = vsel %vm94_vm0, %v662_v58, 0  ;;  %v652_v58 = vld [vmem:[#allocation2 + $0x20] sm:$0xff] }
 0x2a4   :  { %v372_v59 = vpop.permute.xlu1 %371 }
 0x2a5   :  { %v401_v62 = vsub.f32 %v1826_v38, %v372_v59 }
 0x2a6   :  { %v197_v6 = vpop.permute.xlu0 %196 }
 0x2a7   :  { %199 = vst.msk [vmem:[#allocation2 + $0x38] sm:$0xff] %vm94_vm0, %v197_v6  ;;  %v411_v21 = vmul.f32 1.442695, %v401_v62 }
 0x2a8   :  { %v377_v8 = vpop.permute.xlu1 %376 }
 0x2a9   :  { %v402_v22 = vsub.f32 %v1830_v40, %v377_v8  ;;  %1505 = vpow2.f32 %v411_v21 }
 0x2ab   :  { %v413_v9 = vmul.f32 1.442695, %v402_v22 }
 0x2ac   :  { %v367_v16 = vpop.permute.xlu1 %366 }
 0x2ad   :  { %1507 = vpow2.f32 %v413_v9  ;;  %v400_v20 = vsub.f32 %v1834_v42, %v367_v16 }
 0x2ae   :  { %1509 = vpow2.f32 %v407_v13  ;;  %v655_v6 = vld [vmem:[#allocation2 + $0x38] sm:$0xff] }
 0x2af   :  { %v409_v23 = vmul.f32 1.442695, %v400_v20 }
 0x2b0   :  { %v392_v30 = vpop.permute.xlu1 %391 }
 0x2b1   :  { %1511 = vpow2.f32 %v409_v23  ;;  %v405_v40 = vsub.f32 %v1840_v45, %v392_v30 }
 0x2b3   :  { %v1990_v36 = vpop.eup %1505  ;;  %v419_v51 = vmul.f32 1.442695, %v405_v40 }
 0x2b4   :  { %v382_v38 = vpop.permute.xlu1 %381  ;;  %v445_v11 = vsel %vm302_vm2, %v1990_v36, 0.0 }
 0x2b5   :  { %v403_v31 = vsub.f32 %v1844_v47, %v382_v38 }
 0x2b7   :  { %v1992_v39 = vpop.eup %1507  ;;  %v415_v37 = vmul.f32 1.442695, %v403_v31 }
 0x2b8   :  { %v387_v41 = vpop.permute.xlu1 %386  ;;  %v481_v43 = vpack.c.bf16 %v1992_v39, %v1990_v36  ;;  %v1998_v44 = vpop.eup %1509  ;;  %v448_v28 = vsel %vm302_vm2, %v1992_v39, 0.0 }
 0x2b9   :  { %v404_v42 = vsub.f32 %v1850_v50, %v387_v41  ;;  %1513 = vpow2.f32 %v415_v37 }
 0x2bb   :  { %v2000_v46 = vpop.eup %1511  ;;  %v417_v49 = vmul.f32 1.442695, %v404_v42 }
 0x2bc   :  { %v397_v47 = vpop.permute.xlu1 %396  ;;  %v480_v52 = vpack.c.bf16 %v2000_v46, %v1998_v44 }
 0x2bd   :  { %1515 = vpow2.f32 %v417_v49  ;;  %v406_v45 = vsub.f32 %v1846_v48, %v397_v47 }
 0x2be   :  { %1456 = vmatprep.mubr.msk.bf16.mxu1 %vm302_vm2, %v480_v52  ;;  %1517 = vpow2.f32 %v419_v51 }
 0x2bf   :  { %v421_v0 = vmul.f32 1.442695, %v406_v45  ;;  %1457 = vmatmul.mubr.msk.bf16.vlgmr.msra.gmra.mrb[0].mxu1 %vm302_vm2, %v481_v43 }
 0x2c0   :  { %1465 = vmatpush3.bf16.xpose.msra.mxu1 %v676_v53  ;;  %v173_v50 = vpop.permute.xlu1 %172 }
 0x2c1   :  { %1519 = vpow2.f32 %v421_v0  ;;  %175 = vst.msk [vmem:[#allocation2 + $0x28] sm:$0xff] %vm94_vm0, %v173_v50  ;;  %v2076_v50 = vld [vmem:[#allocation3 + $0x40] sm:$0xff] }
 0x2c3   :  { %v2010_v54 = vpop.eup %1513 }
 0x2c4   :  { %v185_v1 = vpop.permute.xlu1 %184  ;;  %v451_v29 = vsel %vm302_vm2, %v2010_v54, 0.0 }
 0x2c5   :  { %187 = vst.msk [vmem:[#allocation2 + $0x30] sm:$0xff] %vm94_vm0, %v185_v1 }
 0x2c7   :  { %v2012_v2 = vpop.eup %1515 }
 0x2c8   :  { %v482_v48 = vpack.c.bf16 %v2012_v2, %v2010_v54  ;;  %v2016_v55 = vpop.eup %1517  ;;  %v653_v59 = vld [vmem:[#allocation2 + $0x28] sm:$0xff] }
 0x2c9   :  { %v457_v14 = vsel %vm302_vm2, %v2016_v55, 0.0 }
 0x2ca   :  { %1460 = vmatprep.mubr.msk.bf16.mxu1 %vm302_vm2, %v482_v48  ;;  %v2078_v48 = vld [vmem:[#allocation3 + $0x48] sm:$0xff] }
 0x2cb   :  { %v2019_v5 = vpop.eup %1519 }
 0x2cc   :  { %v483_v57 = vpack.c.bf16 %v2019_v5, %v2016_v55  ;;  %v654_v62 = vld [vmem:[#allocation2 + $0x30] sm:$0xff]  ;;  %v460_v39 = vsel %vm302_vm2, %v2019_v5, 0.0 }
 0x2ce   :  { %1461 = vmatmul.mubr.msk.bf16.gmra.mrb[4].mxu1 %vm302_vm2, %v483_v57 }
 0x2cf   :  { %1466 = vmatprep.mubr.msk.bf16.mxu1 %vm94_vm0, %v652_v58 }
 0x2d6   :  { %1467 = vmatmul.mubr.msk.bf16.vlgmr.msra.gmra.mrb[8].mxu1 %vm94_vm0, %v653_v59  ;;  %v2083_v59 = vld [vmem:[#allocation3 + $0x58] sm:$0xff] }
 0x2d7   :  { %1470 = vmatprep.mubr.msk.bf16.mxu1 %vm94_vm0, %v654_v62 }
 0x2de   :  { %1471 = vmatmul.mubr.msk.bf16.gmra.mrb[12].mxu1 %vm94_vm0, %v655_v6 }
 0x392   :  { %v2028_v7 = vpop.f32.mrb[0].mxu1 }
 0x393   :  { %v2030_v21 = vpop.f32.mrb[1].mxu1 }
 0x394   :  { %v2032_v8 = vpop.f32.mrb[2].mxu1 }
 0x395   :  { %v2034_v22 = vpop.f32.mrb[3].mxu1 }
 0x3a1   :  { %v2036_v9 = vpop.f32.mrb[4].mxu1 }
 0x3a2   :  { %v2038_v13 = vpop.f32.mrb[5].mxu1 }
 0x3a3   :  { %v2040_v16 = vpop.f32.mrb[6].mxu1 }
 0x3a4   :  { %v2042_v20 = vpop.f32.mrb[7].mxu1 }
 0x3a9   :  { %v2044_v23 = vpop.f32.mrb[8].mxu1 }
 0x3aa   :  { %v2046_v30 = vpop.f32.mrb[9].mxu1  ;;  %v758_v42 = vsel %vm302_vm2, %v2044_v23, -inf }
 0x3ab   :  { %v2048_v38 = vpop.f32.mrb[10].mxu1  ;;  %v752_v31 = vsel %vm302_vm2, %v2046_v30, -inf }
 0x3ac   :  { %753 = vmax.xlane.f32.xlu1 %v752_v31  ;;  %v2052_v40 = vpop.f32.mrb[11].mxu1  ;;  %v761_v41 = vsel %vm302_vm2, %v2048_v38, -inf }
 0x3ad   :  { %v755_v37 = vsel %vm302_vm2, %v2052_v40, -inf }
 0x3ae   :  { %756 = vmax.xlane.f32.xlu0 %v755_v37  ;;  %v2093_v37 = vld [vmem:[#allocation3 + $0x50] sm:$0xff] }
 0x3b0   :  { %762 = vmax.xlane.f32.xlu1 %v761_v41 }
 0x3b1   :  { %v2058_v43 = vpop.f32.mrb[12].mxu1 }
 0x3b2   :  { %759 = vmax.xlane.f32.xlu0 %v758_v42  ;;  %v2062_v49 = vpop.f32.mrb[13].mxu1  ;;  %v770_v53 = vsel %vm302_vm2, %v2058_v43, -inf }
 0x3b3   :  { %v2064_v51 = vpop.f32.mrb[14].mxu1  ;;  %v764_v52 = vsel %vm302_vm2, %v2062_v49, -inf }
 0x3b4   :  { %v2066_v47 = vpop.f32.mrb[15].mxu1  ;;  %v773_v0 = vsel %vm302_vm2, %v2064_v51, -inf }
 0x3b5   :  { %v767_v45 = vsel %vm302_vm2, %v2066_v47, -inf }
 0x3b6   :  { %765 = vmax.xlane.f32.xlu0 %v764_v52  ;;  %768 = vmax.xlane.f32.xlu1 %v767_v45  ;;  %v2128_v45 = vld [vmem:[#allocation3 + $0x70] sm:$0xff] }
 0x3ba   :  { %771 = vmax.xlane.f32.xlu0 %v770_v53  ;;  %774 = vmax.xlane.f32.xlu1 %v773_v0  ;;  %v2111_v0 = vld [vmem:[#allocation3 + $0x68] sm:$0xff] }
 0x439   :  { %v754_v1 = vpop.xlane.xlu1 %753 }
 0x43a   :  { %v2081_v57 = vmax.f32 %v2076_v50, %v754_v1  ;;  %v2113_v1 = vld [vmem:[#allocation3 + $0x60] sm:$0xff] }
 0x43b   :  { %v757_v58 = vpop.xlane.xlu0 %756 }
 0x43c   :  { %1091 = vst.msk [vmem:[#allocation3 + $0x40] sm:$0xff] %vm61_vm1, %v2081_v57  ;;  %v2090_v6 = vmax.f32 %v2078_v48, %v757_v58  ;;  %810 = vperm.xlu0 %1499, %v2081_v57  }
 0x43d   :  { %v763_v31 = vpop.xlane.xlu1 %762 }
 0x43e   :  { %1092 = vst.msk [vmem:[#allocation3 + $0x48] sm:$0xff] %vm61_vm1, %v2090_v6  ;;  %v2100_v42 = vmax.f32 %v2083_v59, %v763_v31  ;;  %815 = vperm.xlu1 %1500, %v2090_v6  }
 0x43f   :  { %v760_v52 = vpop.xlane.xlu0 %759 }
 0x440   :  { %1094 = vst.msk [vmem:[#allocation3 + $0x58] sm:$0xff] %vm61_vm1, %v2100_v42  ;;  %v2108_v53 = vmax.f32 %v2093_v37, %v760_v52  ;;  %825 = vperm.xlu0 %1499, %v2100_v42   ;;  %v2367_v17 = vsub.f32 %v2083_v59, %v2100_v42 }
 0x442   :  { %1093 = vst.msk [vmem:[#allocation3 + $0x50] sm:$0xff] %vm61_vm1, %v2108_v53  ;;  %820 = vperm.xlu1 %1500, %v2108_v53   ;;  %v798_v24 = vmul.f32 1.442695, %v2367_v17 }
 0x443   :  { %v769_v31 = vpop.xlane.xlu1 %768  ;;  %v766_v62 = vpop.xlane.xlu0 %765 }
 0x444   :  { %v2121_v41 = vmax.f32 %v2111_v0, %v769_v31  ;;  %v2124_v52 = vmax.f32 %v2113_v1, %v766_v62 }
 0x446   :  { %1096 = vst.msk [vmem:[#allocation3 + $0x68] sm:$0xff] %vm61_vm1, %v2121_v41  ;;  %1095 = vst.msk [vmem:[#allocation3 + $0x60] sm:$0xff] %vm61_vm1, %v2124_v52  ;;  %835 = vperm.xlu0 %1499, %v2121_v41   ;;  %830 = vperm.xlu1 %1500, %v2124_v52  }
 0x447   :  { %v775_v62 = vpop.xlane.xlu1 %774  ;;  %v772_v31 = vpop.xlane.xlu0 %771 }
 0x448   :  { %v2141_v58 = vmax.f32 %v2126_v35, %v775_v62  ;;  %v2144_v34 = vmax.f32 %v2128_v45, %v772_v31  ;;  %v1504_v62 = vld [vmem:[#allocation11] sm:$0xff]   ;;  %v439_v31 = vsel %vm302_vm2, %v1998_v44, 0.0  ;;  %v454_v44 = vsel %vm302_vm2, %v2012_v2, 0.0 }
 0x44a   :  { %1098 = vst.msk [vmem:[#allocation3 + $0x78] sm:$0xff] %vm61_vm1, %v2141_v58  ;;  %1097 = vst.msk [vmem:[#allocation3 + $0x70] sm:$0xff] %vm61_vm1, %v2144_v34  ;;  %845 = vperm.xlu0 %1499, %v2141_v58   ;;  %840 = vperm.xlu1 %1500, %v2144_v34  }
 0x44e   :  { %938 = vrot.lane.b32.xlu1 %v1504_v62, %s1702_s2 }
 0x469   :  { %440 = vadd.xlane.f32.xlu0 %v439_v31 }
 0x46d   :  { %449 = vadd.xlane.f32.xlu0 %v448_v28 }
 0x471   :  { %452 = vadd.xlane.f32.xlu0 %v451_v29 }
 0x472   :  { %446 = vadd.xlane.f32.xlu1 %v445_v11 }
 0x475   :  { %458 = vadd.xlane.f32.xlu0 %v457_v14 }
 0x476   :  { %455 = vadd.xlane.f32.xlu1 %v454_v44 }
 0x47a   :  { %461 = vadd.xlane.f32.xlu1 %v460_v39 }
 0x4bb   :  { %v811_v28 = vpop.permute.xlu0 %810 }
 0x4bc   :  { %v848_v54 = vsub.f32 %v2046_v30, %v811_v28 }
 0x4bd   :  { %v816_v29 = vpop.permute.xlu1 %815 }
 0x4be   :  { %v856_v62 = vmul.f32 1.442695, %v848_v54  ;;  %v849_v36 = vsub.f32 %v2052_v40, %v816_v29 }
 0x4bf   :  { %v826_v11 = vpop.permute.xlu0 %825 }
 0x4c0   :  { %v858_v31 = vmul.f32 1.442695, %v849_v36  ;;  %v851_v55 = vsub.f32 %v2048_v38, %v826_v11  ;;  %1521 = vpow2.f32 %v856_v62 }
 0x4c1   :  { %v821_v14 = vpop.permute.xlu1 %820 }
 0x4c2   :  { %1523 = vpow2.f32 %v858_v31  ;;  %v862_v2 = vmul.f32 1.442695, %v851_v55  ;;  %v850_v44 = vsub.f32 %v2044_v23, %v821_v14 }
 0x4c4   :  { %1525 = vpow2.f32 %v862_v2  ;;  %v860_v5 = vmul.f32 1.442695, %v850_v44 }
 0x4c5   :  { %v831_v39 = vpop.permute.xlu1 %830  ;;  %v836_v19 = vpop.permute.xlu0 %835 }
 0x4c6   :  { %1527 = vpow2.f32 %v860_v5  ;;  %v852_v30 = vsub.f32 %v2062_v49, %v831_v39  ;;  %v853_v28 = vsub.f32 %v2066_v47, %v836_v19 }
 0x4c8   :  { %v864_v40 = vmul.f32 1.442695, %v852_v30  ;;  %v866_v54 = vmul.f32 1.442695, %v853_v28 }
 0x4c9   :  { %v841_v29 = vpop.permute.xlu1 %840  ;;  %v846_v36 = vpop.permute.xlu0 %845 }
 0x4ca   :  { %1529 = vpow2.f32 %v864_v40  ;;  %v854_v38 = vsub.f32 %v2058_v43, %v841_v29  ;;  %v855_v62 = vsub.f32 %v2064_v51, %v846_v36  ;;  %v1522_v11 = vpop.eup %1521 }
 0x4cb   :  { %1531 = vpow2.f32 %v866_v54 }
 0x4cc   :  { %v1524_v23 = vpop.eup %1523  ;;  %v868_v31 = vmul.f32 1.442695, %v854_v38  ;;  %v870_v55 = vmul.f32 1.442695, %v855_v62  ;;  %v442_v62 = vsel %vm302_vm2, %v2000_v46, 0.0 }
 0x4cd   :  { %v939_v14 = vpop.permute.xlu1 %938  ;;  %v929_v2 = vpack.c.bf16 %v1524_v23, %v1522_v11 }
 0x4ce   :  { %v1526_v44 = vpop.eup %1525  ;;  %1533 = vpow2.f32 %v868_v31  ;;  %1474 = vmatprep.subr.bf16.mxu0 %v939_v14  ;;  %v892_v31 = vsel %vm302_vm2, %v1524_v23, 0.0  ;;  %v2362_v23 = vsub.f32 %v1894_v60, %v1906_v4  ;;  %v2366_v60 = vsub.f32 %v1942_v26, %v1956_v32 }
 0x4cf   :  { %1535 = vpow2.f32 %v870_v55  ;;  %1476 = vmatprep.mubr.msk.bf16.mxu0 %vm302_vm2, %v929_v2  ;;  %1475 = vmatpush3.bf16.msra.mxu0 %v939_v14  ;;  %v898_v19 = vsel %vm302_vm2, %v1526_v44, 0.0  ;;  %v343_v55 = vmul.f32 1.442695, %v335_v3  ;;  %v889_v14 = vsel %vm302_vm2, %v1522_v11, 0.0  ;;  %v423_v11 = vld [vmem:[#allocation4] sm:$0xff] }
 0x4d0   :  { %v1528_v49 = vpop.eup %1527  ;;  %899 = vadd.xlane.f32.xlu1 %v898_v19  ;;  %v2360_v2 = vsub.f32 %v1909_v10, %v1923_v15  ;;  %v2361_v19 = vsub.f32 %v1899_v63, %v1916_v12  ;;  %v2364_v3 = vsub.f32 %v2093_v37, %v2108_v53  ;;  %v2365_v63 = vsub.f32 %v1928_v18, %v1939_v25 }
 0x4d1   :  { %v930_v43 = vpack.c.bf16 %v1526_v44, %v1528_v49  ;;  %v895_v51 = vsel %vm302_vm2, %v1528_v49, 0.0  ;;  %1537 = vpow2.f32 %v343_v55  ;;  %v345_v49 = vmul.f32 1.442695, %v2362_v23 }
 0x4d2   :  { %896 = vadd.xlane.f32.xlu0 %v895_v51  ;;  %v347_v44 = vmul.f32 1.442695, %v2360_v2  ;;  %v349_v46 = vmul.f32 1.442695, %v2361_v19  ;;  %v796_v10 = vmul.f32 1.442695, %v2364_v3  ;;  %v2368_v37 = vsub.f32 %v1944_v27, %v1959_v33 }
 0x4d3   :  { %1477 = vmatmul.mubr.msk.bf16.vlgmr.msra.gmra.mrb[8].mxu0 %vm302_vm2, %v930_v43  ;;  %v353_v12 = vmul.f32 1.442695, %v2365_v63  ;;  %v355_v4 = vmul.f32 1.442695, %v2366_v60  ;;  %v2369_v18 = vsub.f32 %v2111_v0, %v2121_v41  ;;  %v2370_v26 = vsub.f32 %v2113_v1, %v2124_v52  ;;  %v427_v1 = vld [vmem:[#allocation4 + $0x20] sm:$0xff] }
 0x4d4   :  { %v1530_v47 = vpop.eup %1529  ;;  %1539 = vpow2.f32 %v347_v44  ;;  %v357_v53 = vmul.f32 1.442695, %v2368_v37 }
 0x4d5   :  { %v1532_v5 = vpop.eup %1531  ;;  %v901_v39 = vsel %vm302_vm2, %v1530_v47, 0.0  ;;  %1541 = vpow2.f32 %v349_v46  ;;  %v802_v25 = vmul.f32 1.442695, %v2369_v18  ;;  %v800_v32 = vmul.f32 1.442695, %v2370_v26 }
 0x4d6   :  { %902 = vadd.xlane.f32.xlu0 %v901_v39  ;;  %v904_v30 = vsel %vm302_vm2, %v1532_v5, 0.0  ;;  %v931_v28 = vpack.c.bf16 %v1532_v5, %v1530_v47  ;;  %1543 = vpow2.f32 %v345_v49  ;;  %v426_v47 = vld [vmem:[#allocation4 + $0x18] sm:$0xff] }
 0x4d7   :  { %905 = vadd.xlane.f32.xlu1 %v904_v30  ;;  %1545 = vpow2.f32 %v351_v61  ;;  %v425_v30 = vld [vmem:[#allocation4 + $0x10] sm:$0xff] }
 0x4d8   :  { %v1534_v40 = vpop.eup %1533  ;;  %1480 = vmatprep.mubr.msk.bf16.mxu0 %vm302_vm2, %v931_v28  ;;  %1547 = vpow2.f32 %v796_v10  ;;  %v2371_v28 = vsub.f32 %v2126_v35, %v2141_v58  ;;  %v428_v35 = vld [vmem:[#allocation4 + $0x28] sm:$0xff]  ;;  %v430_v10 = vld [vmem:[#allocation4 + $0x38] sm:$0xff] }
 0x4d9   :  { %v1536_v54 = vpop.eup %1535  ;;  %v907_v29 = vsel %vm302_vm2, %v1534_v40, 0.0  ;;  %1549 = vpow2.f32 %v353_v12 }
 0x4da   :  { %908 = vadd.xlane.f32.xlu0 %v907_v29  ;;  %v910_v36 = vsel %vm302_vm2, %v1536_v54, 0.0  ;;  %v932_v38 = vpack.c.bf16 %v1536_v54, %v1534_v40  ;;  %1551 = vpow2.f32 %v355_v4  ;;  %v806_v40 = vmul.f32 1.442695, %v2371_v28 }
 0x4db   :  { %911 = vadd.xlane.f32.xlu1 %v910_v36  ;;  %v1538_v15 = vpop.eup %1537  ;;  %1553 = vpow2.f32 %v798_v24  ;;  %v2372_v29 = vsub.f32 %v2128_v45, %v2144_v34 }
 0x4dc   :  { %1481 = vmatmul.mubr.msk.bf16.gmra.mrb[12].mxu0 %vm302_vm2, %v932_v38  ;;  %v431_v59 = vmul.f32 %v1538_v15, %v423_v11  ;;  %1555 = vpow2.f32 %v357_v53 }
 0x4dd   :  { %1557 = vpow2.f32 %v802_v25  ;;  %v804_v36 = vmul.f32 1.442695, %v2372_v29  ;;  %v877_v29 = vld [vmem:[#allocation4 + $0x60] sm:$0xff] }
 0x4de   :  { %443 = vadd.xlane.f32.xlu0 %v442_v62  ;;  %v1540_v43 = vpop.eup %1539  ;;  %1559 = vpow2.f32 %v800_v32 }
 0x4df   :  { %893 = vadd.xlane.f32.xlu1 %v892_v31  ;;  %v1542_v42 = vpop.eup %1541  ;;  %v433_v55 = vmul.f32 %v1540_v43, %v425_v30  ;;  %1561 = vpow2.f32 %v806_v40 }
 0x4e0   :  { %v2229_v5 = vpop.eup %1543  ;;  %v434_v33 = vmul.f32 %v1542_v42, %v426_v47  ;;  %1563 = vpow2.f32 %v804_v36  ;;  %v876_v47 = vld [vmem:[#allocation4 + $0x58] sm:$0xff] }
 0x4e1   :  { %v1546_v41 = vpop.eup %1545 }
 0x4e2   :  { %890 = vadd.xlane.f32.xlu0 %v889_v14  ;;  %v2233_v52 = vpop.eup %1547  ;;  %v435_v38 = vmul.f32 %v1546_v41, %v427_v1  ;;  %v429_v14 = vld [vmem:[#allocation4 + $0x30] sm:$0xff]  ;;  %v2374_v1 = vsub.f32 %v2076_v50, %v2081_v57 }
 0x4e3   :  { %v1550_v54 = vpop.eup %1549  ;;  %v879_v50 = vld [vmem:[#allocation4 + $0x70] sm:$0xff] }
 0x4e4   :  { %v1552_v62 = vpop.eup %1551  ;;  %v436_v49 = vmul.f32 %v1550_v54, %v428_v35 }
 0x4e5   :  { %v1554_v2 = vpop.eup %1553  ;;  %v437_v34 = vmul.f32 %v1552_v62, %v429_v14 }
 0x4e6   :  { %v1556_v46 = vpop.eup %1555 }
 0x4e7   :  { %v2244_v45 = vpop.eup %1557  ;;  %v438_v12 = vmul.f32 %v1556_v46, %v430_v10 }
 0x4e8   :  { %v1560_v56 = vpop.eup %1559 }
 0x4e9   :  { %v1562_v24 = vpop.eup %1561 }
 0x4f0   :  { %577 = vperm.xlu1 %1500, %v1538_v15  }
 0x4f4   :  { %587 = vperm.xlu1 %1500, %v1540_v43   ;;  %v1564_v43 = vpop.eup %1563 }
 0x4f6   :  { %v441_v51 = vpop.xlane.xlu0 %440 }
 0x4f7   :  { %v463_v27 = vadd.f32 %v441_v51, %v431_v59 }
 0x4f8   :  { %592 = vperm.xlu1 %1500, %v1542_v42   ;;  %582 = vperm.xlu0 %1499, %v2229_v5  }
 0x4f9   :  { %472 = vst.msk [vmem:[#allocation4] sm:$0xff] %vm61_vm1, %v463_v27  ;;  %v2373_v27 = vsub.f32 %v2078_v48, %v2090_v6  ;;  %v885_v48 = vmul.f32 %v1560_v56, %v877_v29  ;;  %v571_v29 = vld [vmem:[#allocation5 + $0x20] sm:$0xff] }
 0x4fa   :  { %v450_v0 = vpop.xlane.xlu0 %449 }
 0x4fb   :  { %v466_v39 = vadd.f32 %v450_v0, %v434_v33  ;;  %v794_v33 = vmul.f32 1.442695, %v2373_v27  ;;  %v884_v0 = vmul.f32 %v1554_v2, %v876_v47  ;;  %v568_v27 = vld [vmem:[#allocation5 + $0x8] sm:$0xff] }
 0x4fc   :  { %1039 = vperm.xlu1 %1500, %v2233_v52   ;;  %597 = vperm.xlu0 %1499, %v1546_v41   ;;  %v875_v41 = vld [vmem:[#allocation4 + $0x50] sm:$0xff] }
 0x4fd   :  { %475 = vst.msk [vmem:[#allocation4 + $0x18] sm:$0xff] %vm61_vm1, %v466_v39  ;;  %v792_v39 = vmul.f32 1.442695, %v2374_v1  ;;  %v883_v40 = vmul.f32 %v2233_v52, %v875_v41  ;;  %v887_v52 = vmul.f32 %v1564_v43, %v879_v50 }
 0x4fe   :  { %v453_v31 = vpop.xlane.xlu0 %452 }
 0x4ff   :  { %v467_v44 = vadd.f32 %v453_v31, %v435_v38  ;;  %v447_v19 = vpop.xlane.xlu1 %446  ;;  %v878_v38 = vld [vmem:[#allocation4 + $0x68] sm:$0xff] }
 0x500   :  { %v465_v58 = vadd.f32 %v447_v19, %v433_v55  ;;  %602 = vperm.xlu1 %1500, %v1550_v54   ;;  %1044 = vperm.xlu0 %1499, %v1554_v2   ;;  %v886_v6 = vmul.f32 %v2244_v45, %v878_v38  ;;  %v880_v55 = vld [vmem:[#allocation4 + $0x78] sm:$0xff]  ;;  %v424_v19 = vld [vmem:[#allocation4 + $0x8] sm:$0xff]  ;;  %v1110_v1 = vld [vmem:[#allocation4] sm:$0xff] }
 0x501   :  { %476 = vst.msk [vmem:[#allocation4 + $0x20] sm:$0xff] %vm61_vm1, %v467_v44  ;;  %v888_v2 = vmul.f32 %v1562_v24, %v880_v55  ;;  %v572_v55 = vld [vmem:[#allocation5 + $0x28] sm:$0xff] }
 0x502   :  { %474 = vst.msk [vmem:[#allocation4 + $0x10] sm:$0xff] %vm61_vm1, %v465_v58  ;;  %v459_v23 = vpop.xlane.xlu0 %458 }
 0x503   :  { %v469_v61 = vadd.f32 %v459_v23, %v437_v34  ;;  %v456_v3 = vpop.xlane.xlu1 %455 }
 0x504   :  { %v468_v15 = vadd.f32 %v456_v3, %v436_v49  ;;  %1054 = vperm.xlu1 %1500, %v2244_v45   ;;  %1049 = vperm.xlu0 %1499, %v1560_v56   ;;  %v1113_v63 = vld [vmem:[#allocation4 + $0x18] sm:$0xff]  ;;  %v874_v45 = vld [vmem:[#allocation4 + $0x48] sm:$0xff]  ;;  %v432_v56 = vmul.f32 %v2229_v5, %v424_v19 }
 0x505   :  { %478 = vst.msk [vmem:[#allocation4 + $0x30] sm:$0xff] %vm61_vm1, %v469_v61  ;;  %1565 = vrcp.f32 %v1113_v63 }
 0x506   :  { %477 = vst.msk [vmem:[#allocation4 + $0x28] sm:$0xff] %vm61_vm1, %v468_v15  ;;  %v873_v15 = vld [vmem:[#allocation4 + $0x40] sm:$0xff] }
 0x507   :  { %v462_v60 = vpop.xlane.xlu1 %461 }
 0x508   :  { %v470_v4 = vadd.f32 %v462_v60, %v438_v12  ;;  %612 = vperm.xlu1 %1500, %v1556_v46   ;;  %607 = vperm.xlu0 %1499, %v1552_v62   ;;  %v1114_v11 = vld [vmem:[#allocation4 + $0x20] sm:$0xff] }
 0x509   :  { %v1112_v17 = vld [vmem:[#allocation4 + $0x10] sm:$0xff] }
 0x50a   :  { %479 = vst.msk [vmem:[#allocation4 + $0x38] sm:$0xff] %vm61_vm1, %v470_v4  ;;  %1567 = vrcp.f32 %v1112_v17 }
 0x50b   :  { %1569 = vrcp.f32 %v1114_v11 }
 0x50c   :  { %1064 = vperm.xlu1 %1500, %v1562_v24   ;;  %1059 = vperm.xlu0 %1499, %v1564_v43   ;;  %v1116_v53 = vld [vmem:[#allocation4 + $0x30] sm:$0xff]  ;;  %v567_v24 = vld [vmem:[#allocation5] sm:$0xff] }
 0x50d   :  { %v1115_v37 = vld [vmem:[#allocation4 + $0x28] sm:$0xff] }
 0x50e   :  { %1571 = vrcp.f32 %v1115_v37 }
 0x50f   :  { %v1566_v18 = vpop.eup %1565  ;;  %1573 = vrcp.f32 %v1116_v53 }
 0x510   :  { %1143 = vperm.xlu1 %1500, %v1566_v18  }
 0x511   :  { %v1117_v25 = vld [vmem:[#allocation4 + $0x38] sm:$0xff] }
 0x512   :  { %1575 = vrcp.f32 %v1117_v25 }
 0x513   :  { %1577 = vpow2.f32 %v794_v33  ;;  %v570_v33 = vld [vmem:[#allocation5 + $0x18] sm:$0xff] }
 0x514   :  { %v1568_v26 = vpop.eup %1567  ;;  %1579 = vpow2.f32 %v792_v39 }
 0x515   :  { %1138 = vperm.xlu0 %1499, %v1568_v26   ;;  %v1570_v32 = vpop.eup %1569  ;;  %v569_v26 = vld [vmem:[#allocation5 + $0x10] sm:$0xff] }
 0x518   :  { %v1572_v59 = vpop.eup %1571 }
 0x519   :  { %1148 = vperm.xlu0 %1499, %v1570_v32   ;;  %1153 = vperm.xlu1 %1500, %v1572_v59   ;;  %v1574_v42 = vpop.eup %1573 }
 0x51c   :  { %v1576_v51 = vpop.eup %1575 }
 0x51d   :  { %1158 = vperm.xlu0 %1499, %v1574_v42   ;;  %1163 = vperm.xlu1 %1500, %v1576_v51   ;;  %v2263_v58 = vpop.eup %1577 }
 0x51e   :  { %v2267_v61 = vpop.eup %1579  ;;  %v882_v3 = vmul.f32 %v2263_v58, %v874_v45 }
 0x51f   :  { %v881_v17 = vmul.f32 %v2267_v61, %v873_v15 }
 0x55d   :  { %v900_v30 = vpop.xlane.xlu1 %899 }
 0x55e   :  { %v916_v28 = vadd.f32 %v900_v30, %v884_v0 }
 0x55f   :  { %v897_v54 = vpop.xlane.xlu0 %896 }
 0x560   :  { %924 = vst.msk [vmem:[#allocation4 + $0x58] sm:$0xff] %vm61_vm1, %v916_v28  ;;  %v915_v36 = vadd.f32 %v897_v54, %v883_v40 }
 0x562   :  { %923 = vst.msk [vmem:[#allocation4 + $0x50] sm:$0xff] %vm61_vm1, %v915_v36 }
 0x563   :  { %v903_v62 = vpop.xlane.xlu0 %902 }
 0x564   :  { %v906_v57 = vpop.xlane.xlu1 %905  ;;  %v917_v31 = vadd.f32 %v903_v62, %v885_v48 }
 0x565   :  { %v918_v14 = vadd.f32 %v906_v57, %v886_v6 }
 0x566   :  { %925 = vst.msk [vmem:[#allocation4 + $0x60] sm:$0xff] %vm61_vm1, %v917_v31 }
 0x567   :  { %926 = vst.msk [vmem:[#allocation4 + $0x68] sm:$0xff] %vm61_vm1, %v918_v14  ;;  %v909_v44 = vpop.xlane.xlu0 %908  ;;  %v1241_v35 = vld [vmem:[#allocation4 + $0x58] sm:$0xff] }
 0x568   :  { %v912_v46 = vpop.xlane.xlu1 %911  ;;  %v919_v34 = vadd.f32 %v909_v44, %v887_v52  ;;  %1581 = vrcp.f32 %v1241_v35 }
 0x569   :  { %v920_v23 = vadd.f32 %v912_v46, %v888_v2  ;;  %v1240_v49 = vld [vmem:[#allocation4 + $0x50] sm:$0xff] }
 0x56a   :  { %927 = vst.msk [vmem:[#allocation4 + $0x70] sm:$0xff] %vm61_vm1, %v919_v34  ;;  %1583 = vrcp.f32 %v1240_v49  ;;  %v573_v46 = vld [vmem:[#allocation5 + $0x30] sm:$0xff]  ;;  %v574_v34 = vld [vmem:[#allocation5 + $0x38] sm:$0xff] }
 0x56b   :  { %928 = vst.msk [vmem:[#allocation4 + $0x78] sm:$0xff] %vm61_vm1, %v920_v23  ;;  %v444_v10 = vpop.xlane.xlu0 %443 }
 0x56c   :  { %v894_v63 = vpop.xlane.xlu1 %893  ;;  %v464_v12 = vadd.f32 %v444_v10, %v432_v56 }
 0x56d   :  { %v914_v60 = vadd.f32 %v894_v63, %v882_v3  ;;  %v1242_v4 = vld [vmem:[#allocation4 + $0x60] sm:$0xff] }
 0x56e   :  { %473 = vst.msk [vmem:[#allocation4 + $0x8] sm:$0xff] %vm61_vm1, %v464_v12  ;;  %1585 = vrcp.f32 %v1242_v4  ;;  %v1243_v5 = vld [vmem:[#allocation4 + $0x68] sm:$0xff] }
 0x56f   :  { %922 = vst.msk [vmem:[#allocation4 + $0x48] sm:$0xff] %vm61_vm1, %v914_v60  ;;  %v891_v11 = vpop.xlane.xlu0 %890  ;;  %1587 = vrcp.f32 %v1243_v5 }
 0x570   :  { %v913_v43 = vadd.f32 %v891_v11, %v881_v17  ;;  %v578_v37 = vpop.permute.xlu1 %577 }
 0x571   :  { %v615_v53 = vmul.f32 %v578_v37, %v567_v24  ;;  %v1244_v18 = vld [vmem:[#allocation4 + $0x70] sm:$0xff] }
 0x572   :  { %v1582_v25 = vpop.eup %1581  ;;  %921 = vst.msk [vmem:[#allocation4 + $0x40] sm:$0xff] %vm61_vm1, %v913_v43  ;;  %1589 = vrcp.f32 %v1244_v18  ;;  %v1245_v32 = vld [vmem:[#allocation4 + $0x78] sm:$0xff] }
 0x573   :  { %v623_v59 = vadd.f32 %v615_v53, %v2030_v21  ;;  %1271 = vperm.xlu1 %1500, %v1582_v25   ;;  %1591 = vrcp.f32 %v1245_v32 }
 0x574   :  { %v1584_v42 = vpop.eup %1583  ;;  %v588_v51 = vpop.permute.xlu1 %587  ;;  %1593 = vrcp.f32 %v1110_v1  ;;  %v1022_v1 = vld [vmem:[#allocation5 + $0x58] sm:$0xff] }
 0x575   :  { %631 = vst.msk [vmem:[#allocation5] sm:$0xff] %vm94_vm0, %v623_v59  ;;  %v617_v47 = vmul.f32 %v588_v51, %v569_v26  ;;  %1266 = vperm.xlu0 %1499, %v1584_v42   ;;  %v1111_v40 = vld [vmem:[#allocation4 + $0x8] sm:$0xff] }
 0x576   :  { %1595 = vrcp.f32 %v1111_v40  ;;  %v1239_v57 = vld [vmem:[#allocation4 + $0x48] sm:$0xff] }
 0x577   :  { %v625_v41 = vadd.f32 %v2028_v7, %v617_v47  ;;  %v583_v0 = vpop.permute.xlu0 %582 }
 0x578   :  { %v1586_v39 = vpop.eup %1585  ;;  %v616_v30 = vmul.f32 %v583_v0, %v568_v27  ;;  %v593_v28 = vpop.permute.xlu1 %592  ;;  %v1021_v0 = vld [vmem:[#allocation5 + $0x50] sm:$0xff] }
 0x579   :  { %v1588_v54 = vpop.eup %1587  ;;  %633 = vst.msk [vmem:[#allocation5 + $0x10] sm:$0xff] %vm94_vm0, %v625_v41  ;;  %v618_v21 = vmul.f32 %v593_v28, %v570_v33  ;;  %1276 = vperm.xlu0 %1499, %v1586_v39   ;;  %v1238_v7 = vld [vmem:[#allocation4 + $0x40] sm:$0xff] }
 0x57a   :  { %v624_v36 = vadd.f32 %v616_v30, %v2034_v22  ;;  %1281 = vperm.xlu1 %1500, %v1588_v54   ;;  %1597 = vrcp.f32 %v1238_v7  ;;  %v1026_v7 = vld [vmem:[#allocation5 + $0x78] sm:$0xff] }
 0x57b   :  { %v626_v38 = vadd.f32 %v2032_v8, %v618_v21  ;;  %v598_v48 = vpop.permute.xlu0 %597  ;;  %1599 = vrcp.f32 %v1239_v57 }
 0x57c   :  { %v1590_v6 = vpop.eup %1589  ;;  %632 = vst.msk [vmem:[#allocation5 + $0x8] sm:$0xff] %vm94_vm0, %v624_v36  ;;  %v619_v62 = vmul.f32 %v598_v48, %v571_v29  ;;  %v2282_v50 = vpop.permute.xlu1 %1039  ;;  %v1023_v48 = vld [vmem:[#allocation5 + $0x60] sm:$0xff] }
 0x57d   :  { %v1592_v31 = vpop.eup %1591  ;;  %634 = vst.msk [vmem:[#allocation5 + $0x18] sm:$0xff] %vm94_vm0, %v626_v38  ;;  %1286 = vperm.xlu0 %1499, %v1590_v6   ;;  %v1069_v39 = vmul.f32 %v2282_v50, %v1021_v0  ;;  %v1025_v38 = vld [vmem:[#allocation5 + $0x70] sm:$0xff]  ;;  %v1024_v6 = vld [vmem:[#allocation5 + $0x68] sm:$0xff] }
 0x57e   :  { %v627_v22 = vadd.f32 %v619_v62, %v2038_v13  ;;  %1291 = vperm.xlu1 %1500, %v1592_v31   ;;  %v1594_v19 = vpop.eup %1593 }
 0x57f   :  { %v2286_v8 = vpop.permute.xlu0 %1044 }
 0x580   :  { %635 = vst.msk [vmem:[#allocation5 + $0x20] sm:$0xff] %vm94_vm0, %v627_v22  ;;  %v603_v14 = vpop.permute.xlu1 %602  ;;  %v1596_v35 = vpop.eup %1595  ;;  %v1104_v24 = vld [vmem:[#allocation5 + $0x10] sm:$0xff]  ;;  %v1070_v28 = vmul.f32 %v2286_v8, %v1022_v1 }
 0x581   :  { %v620_v52 = vmul.f32 %v603_v14, %v572_v55  ;;  %1029 = vperm.xlu0 %1499, %v2267_v61  }
 0x582   :  { %1034 = vperm.xlu1 %1500, %v2263_v58  }
 0x583   :  { %v628_v2 = vadd.f32 %v620_v52, %v2042_v20  ;;  %v2292_v44 = vpop.permute.xlu0 %1049 }
 0x584   :  { %v2294_v13 = vpop.permute.xlu1 %1054  ;;  %v1598_v23 = vpop.eup %1597  ;;  %v1105_v63 = vld [vmem:[#allocation5 + $0x18] sm:$0xff]  ;;  %v1071_v57 = vmul.f32 %v2292_v44, %v1023_v48 }
 0x585   :  { %636 = vst.msk [vmem:[#allocation5 + $0x28] sm:$0xff] %vm94_vm0, %v628_v2  ;;  %1128 = vperm.xlu0 %1499, %v1594_v19   ;;  %v1600_v61 = vpop.eup %1599  ;;  %v1072_v8 = vmul.f32 %v2294_v13, %v1024_v6 }
 0x586   :  { %1133 = vperm.xlu1 %1500, %v1596_v35  }
 0x587   :  { %v608_v45 = vpop.permute.xlu0 %607 }
 0x588   :  { %v621_v49 = vmul.f32 %v608_v45, %v573_v46  ;;  %v613_v56 = vpop.permute.xlu1 %612 }
 0x589   :  { %v622_v58 = vmul.f32 %v613_v56, %v574_v34  ;;  %1256 = vperm.xlu0 %1499, %v1598_v23  }
 0x58a   :  { %v629_v20 = vadd.f32 %v2036_v9, %v621_v49  ;;  %1261 = vperm.xlu1 %1500, %v1600_v61   ;;  %v1106_v9 = vld [vmem:[#allocation5 + $0x20] sm:$0xff] }
 0x58b   :  { %v630_v3 = vadd.f32 %v2040_v16, %v622_v58  ;;  %v1060_v15 = vpop.permute.xlu0 %1059 }
 0x58c   :  { %637 = vst.msk [vmem:[#allocation5 + $0x30] sm:$0xff] %vm94_vm0, %v629_v20  ;;  %v1065_v10 = vpop.permute.xlu1 %1064  ;;  %v1107_v37 = vld [vmem:[#allocation5 + $0x28] sm:$0xff]  ;;  %v1073_v62 = vmul.f32 %v1060_v15, %v1025_v38 }
 0x58d   :  { %638 = vst.msk [vmem:[#allocation5 + $0x38] sm:$0xff] %vm94_vm0, %v630_v3  ;;  %v1074_v31 = vmul.f32 %v1065_v10, %v1026_v7 }
 0x590   :  { %v1144_v12 = vpop.permute.xlu1 %1143 }
 0x591   :  { %v1169_v60 = vmul.f32 %v1144_v12, %v1105_v63 }
 0x593   :  { %v1411_v4 = vpack.c.bf16 %v1169_v60, %v1169_v60  ;;  %v1108_v32 = vld [vmem:[#allocation5 + $0x30] sm:$0xff] }
 0x594   :  { %v1139_v17 = vpop.permute.xlu0 %1138  ;;  %v1109_v42 = vld [vmem:[#allocation5 + $0x38] sm:$0xff] }
 0x595   :  { %v1168_v5 = vmul.f32 %v1139_v17, %v1104_v24  ;;  %1193 = vrot.lane.b32.xlu1 %v1411_v4, %s1703_s23 }
 0x597   :  { %v1410_v11 = vpack.c.bf16 %v1168_v5, %v1168_v5 }
 0x598   :  { %v1149_v43 = vpop.permute.xlu0 %1148  ;;  %v1154_v16 = vpop.permute.xlu1 %1153 }
 0x599   :  { %v1170_v53 = vmul.f32 %v1149_v43, %v1106_v9  ;;  %v1171_v18 = vmul.f32 %v1154_v16, %v1107_v37  ;;  %1191 = vrot.lane.b32.xlu0 %v1410_v11, %s1703_s23  ;;  %v1019_v9 = vld [vmem:[#allocation5 + $0x40] sm:$0xff]  ;;  %v1020_v37 = vld [vmem:[#allocation5 + $0x48] sm:$0xff] }
 0x59b   :  { %v1412_v25 = vpack.c.bf16 %v1170_v53, %v1170_v53  ;;  %v1413_v26 = vpack.c.bf16 %v1171_v18, %v1171_v18 }
 0x59c   :  { %v1159_v59 = vpop.permute.xlu0 %1158  ;;  %v1164_v51 = vpop.permute.xlu1 %1163 }
 0x59d   :  { %v1172_v47 = vmul.f32 %v1159_v59, %v1108_v32  ;;  %v1173_v27 = vmul.f32 %v1164_v51, %v1109_v42  ;;  %1208 = vrot.lane.b32.xlu1 %v1413_v26, %s1696_s22  ;;  %1206 = vrot.lane.b32.xlu0 %v1412_v25, %s1696_s22  ;;  %v1102_v42 = vld [vmem:[#allocation5] sm:$0xff] }
 0x59f   :  { %v1414_v33 = vpack.c.bf16 %v1172_v47, %v1172_v47  ;;  %v1415_v41 = vpack.c.bf16 %v1173_v27, %v1173_v27  ;;  %v1103_v47 = vld [vmem:[#allocation5 + $0x8] sm:$0xff] }
 0x5a1   :  { %1223 = vrot.lane.b32.xlu1 %v1415_v41, %s1702_s2  ;;  %1221 = vrot.lane.b32.xlu0 %v1414_v33, %s1702_s2 }
 0x5a6   :  { %v1478_v30 = vpop.f32.mrb[8].mxu0 }
 0x5a7   :  { %v1077_v40 = vadd.f32 %v1478_v30, %v1069_v39  ;;  %v987_v54 = vpop.f32.mrb[9].mxu0 }
 0x5a8   :  { %v1479_v21 = vpop.f32.mrb[10].mxu0 }
 0x5a9   :  { %1085 = vst.msk [vmem:[#allocation5 + $0x50] sm:$0xff] %vm94_vm0, %v1077_v40  ;;  %v1078_v29 = vadd.f32 %v1479_v21, %v1070_v28  ;;  %v990_v36 = vpop.f32.mrb[11].mxu0 }
 0x5ab   :  { %1086 = vst.msk [vmem:[#allocation5 + $0x58] sm:$0xff] %vm94_vm0, %v1078_v29 }
 0x5af   :  { %v1482_v50 = vpop.f32.mrb[12].mxu0 }
 0x5b0   :  { %v1081_v22 = vadd.f32 %v1482_v50, %v1073_v62  ;;  %v1003_v55 = vpop.f32.mrb[13].mxu0  ;;  %v1232_v23 = vld [vmem:[#allocation5 + $0x50] sm:$0xff] }
 0x5b1   :  { %v1079_v14 = vadd.f32 %v1071_v57, %v1003_v55  ;;  %v1483_v52 = vpop.f32.mrb[14].mxu0 }
 0x5b2   :  { %1089 = vst.msk [vmem:[#allocation5 + $0x70] sm:$0xff] %vm94_vm0, %v1081_v22  ;;  %v1082_v2 = vadd.f32 %v1483_v52, %v1074_v31  ;;  %v1006_v19 = vpop.f32.mrb[15].mxu0  ;;  %v1233_v44 = vld [vmem:[#allocation5 + $0x58] sm:$0xff] }
 0x5b3   :  { %1087 = vst.msk [vmem:[#allocation5 + $0x60] sm:$0xff] %vm94_vm0, %v1079_v14  ;;  %v1080_v35 = vadd.f32 %v1072_v8, %v1006_v19 }
 0x5b4   :  { %1090 = vst.msk [vmem:[#allocation5 + $0x78] sm:$0xff] %vm94_vm0, %v1082_v2 }
 0x5b5   :  { %1088 = vst.msk [vmem:[#allocation5 + $0x68] sm:$0xff] %vm94_vm0, %v1080_v35 }
 0x5b9   :  { %v1236_v60 = vld [vmem:[#allocation5 + $0x70] sm:$0xff] }
 0x5ba   :  { %v1234_v61 = vld [vmem:[#allocation5 + $0x60] sm:$0xff] }
 0x5bb   :  { %v1237_v24 = vld [vmem:[#allocation5 + $0x78] sm:$0xff] }
 0x5bc   :  { %v1235_v3 = vld [vmem:[#allocation5 + $0x68] sm:$0xff] }
 0x5f2   :  { %v1272_v46 = vpop.permute.xlu1 %1271 }
 0x5f3   :  { %v1297_v34 = vmul.f32 %v1272_v46, %v1233_v44 }
 0x5f4   :  { %v1267_v45 = vpop.permute.xlu0 %1266 }
 0x5f5   :  { %v1419_v49 = vpack.c.bf16 %v1297_v34, %v1297_v34  ;;  %v1296_v13 = vmul.f32 %v1267_v45, %v1232_v23 }
 0x5f7   :  { %v1418_v56 = vpack.c.bf16 %v1296_v13, %v1296_v13  ;;  %1320 = vrot.lane.b32.xlu1 %v1419_v49, %s1703_s23 }
 0x5f8   :  { %v1277_v58 = vpop.permute.xlu0 %1276 }
 0x5f9   :  { %v1298_v20 = vmul.f32 %v1277_v58, %v1234_v61  ;;  %v1282_v10 = vpop.permute.xlu1 %1281  ;;  %1318 = vrot.lane.b32.xlu0 %v1418_v56, %s1703_s23 }
 0x5fa   :  { %v1299_v15 = vmul.f32 %v1282_v10, %v1235_v3 }
 0x5fb   :  { %v1420_v63 = vpack.c.bf16 %v1298_v20, %v1298_v20 }
 0x5fc   :  { %v1421_v12 = vpack.c.bf16 %v1299_v15, %v1299_v15  ;;  %v1287_v4 = vpop.permute.xlu0 %1286 }
 0x5fd   :  { %v1300_v17 = vmul.f32 %v1287_v4, %v1236_v60  ;;  %v1292_v5 = vpop.permute.xlu1 %1291  ;;  %1332 = vrot.lane.b32.xlu0 %v1420_v63, %s1696_s22 }
 0x5fe   :  { %v1301_v11 = vmul.f32 %v1292_v5, %v1237_v24  ;;  %1334 = vrot.lane.b32.xlu1 %v1421_v12, %s1696_s22  ;;  %s1707_s22 = smov [#allocation12]  }
 0x5ff   :  { %v1422_v43 = vpack.c.bf16 %v1300_v17, %v1300_v17  ;;  %s1359_s25 = sshll.u32 %s1707_s22, 4  ;;  %s1360_s25 = int_to_ptr.vmem [resolvable:$true] %s1359_s25 }
 0x600   :  { %v1423_v16 = vpack.c.bf16 %v1301_v11, %v1301_v11  ;;  %v1030_v53 = vpop.permute.xlu0 %1029  ;;  %s1667_s26 = scalar_lea.vmem %s1360_s25, 256  ;;  %p1672_p11 = scmp.lt.s32.totalorder %s1360_s25, %s1360_s25 }
 0x601   :  { %v1067_v18 = vmul.f32 %v1030_v53, %v1019_v9  ;;  %v1035_v25 = vpop.permute.xlu1 %1034  ;;  %1346 = vrot.lane.b32.xlu0 %v1422_v43, %s1702_s2  ;;  %p1668_p10 = scmp.ne.s32.totalorder %s1360_s25, %s1667_s26  ;;  %p1673_p12 = scmp.lt.s32.totalorder %s1667_s26, %s1667_s26 }
 0x602   :  { %v1068_v26 = vmul.f32 %v1035_v25, %v1020_v37  ;;  %1348 = vrot.lane.b32.xlu1 %v1423_v16, %s1702_s2 }
 0x603   :  { %v1075_v32 = vadd.f32 %v1067_v18, %v987_v54  ;;  %p1674_p13 = por %p1673_p12, %p1672_p11 }
 0x604   :  { %v1076_v59 = vadd.f32 %v1068_v26, %v990_v36  ;;  %v1129_v51 = vpop.permute.xlu0 %1128 }
 0x605   :  { %1083 = vst.msk [vmem:[#allocation5 + $0x40] sm:$0xff] %vm94_vm0, %v1075_v32  ;;  %v1134_v27 = vpop.permute.xlu1 %1133  ;;  %v1166_v33 = vmul.f32 %v1129_v51, %v1102_v42  ;;  %p1675_p0 = pnand %p1674_p13, %p1668_p10 }
 0x606   :  { %1084 = vst.msk [vmem:[#allocation5 + $0x48] sm:$0xff] %vm94_vm0, %v1076_v59  ;;  %v1167_v41 = vmul.f32 %v1134_v27, %v1103_v47 }
 0x607   :  { %v1408_v0 = vpack.c.bf16 %v1166_v33, %v1166_v33 }
 0x608   :  { %v1409_v1 = vpack.c.bf16 %v1167_v41, %v1167_v41  ;;  %v1257_v39 = vpop.permute.xlu0 %1256 }
 0x609   :  { %1183 = vst.msk [vmem:[#allocation12] sm:$0xf] %vm1182_vm3, %v1408_v0  ;;  %v1262_v30 = vpop.permute.xlu1 %1261 }
 0x60a   :  { %1184 = vst.msk [vmem:[#allocation12 + $0x8] sm:$0xf] %vm1182_vm3, %v1409_v1 }
 0x60c   :  { %v1230_v28 = vld [vmem:[#allocation5 + $0x40] sm:$0xff]  ;;  %v1192_v40 = vpop.permute.xlu0 %1191 }
 0x60d   :  { %v1231_v54 = vld [vmem:[#allocation5 + $0x48] sm:$0xff]  ;;  %v1294_v21 = vmul.f32 %v1257_v39, %v1230_v28  ;;  %v1194_v29 = vpop.permute.xlu1 %1193  ;;  %1198 = vst.msk [vmem:[#allocation12] sm:$0xf] %vm1197_vm4, %v1192_v40 }
 0x60e   :  { %v1295_v36 = vmul.f32 %v1262_v30, %v1231_v54  ;;  %1199 = vst.msk [vmem:[#allocation12 + $0x8] sm:$0xf] %vm1197_vm4, %v1194_v29 }
 0x60f   :  { %v1416_v38 = vpack.c.bf16 %v1294_v21, %v1294_v21 }
 0x610   :  { %v1417_v48 = vpack.c.bf16 %v1295_v36, %v1295_v36  ;;  %v1207_v7 = vpop.permute.xlu0 %1206 }
 0x611   :  { %1310 = vst.msk [vmem:[#allocation12 + $0x4] sm:$0xf] %vm1182_vm3, %v1416_v38  ;;  %v1209_v6 = vpop.permute.xlu1 %1208 }
 0x612   :  { %1213 = vst.msk [vmem:[#allocation12] sm:$0xf] %vm1212_vm5, %v1207_v7  ;;  %1214 = vst.msk [vmem:[#allocation12 + $0x8] sm:$0xf] %vm1212_vm5, %v1209_v6 }
 0x613   :  { %1311 = vst.msk [vmem:[#allocation12 + $0xc] sm:$0xf] %vm1182_vm3, %v1417_v48 }
 0x614   :  { %v1222_v62 = vpop.permute.xlu0 %1221 }
 0x615   :  { %v1224_v57 = vpop.permute.xlu1 %1223  ;;  %1228 = vst.msk [vmem:[#allocation12] sm:$0xf] %vm1227_vm6, %v1222_v62 }
 0x616   :  { %1229 = vst.msk [vmem:[#allocation12 + $0x8] sm:$0xf] %vm1227_vm6, %v1224_v57 }
 0x669   :  { %v1321_v50 = vpop.permute.xlu1 %1320 }
 0x66a   :  { %1325 = vst.msk [vmem:[#allocation12 + $0xc] sm:$0xf] %vm1197_vm4, %v1321_v50 }
 0x66b   :  { %v1319_v31 = vpop.permute.xlu0 %1318 }
 0x66c   :  { %1324 = vst.msk [vmem:[#allocation12 + $0x4] sm:$0xf] %vm1197_vm4, %v1319_v31 }
 0x66f   :  { %v1333_v22 = vpop.permute.xlu0 %1332 }
 0x670   :  { %v1335_v55 = vpop.permute.xlu1 %1334  ;;  %1338 = vst.msk [vmem:[#allocation12 + $0x4] sm:$0xf] %vm1212_vm5, %v1333_v22 }
 0x671   :  { %1339 = vst.msk [vmem:[#allocation12 + $0xc] sm:$0xf] %vm1212_vm5, %v1335_v55 }
 0x673   :  { %v1347_v8 = vpop.permute.xlu0 %1346 }
 0x674   :  { %v1349_v14 = vpop.permute.xlu1 %1348  ;;  %1352 = vst.msk [vmem:[#allocation12 + $0x4] sm:$0xf] %vm1227_vm6, %v1347_v8 }
 0x675   :  { %1353 = vst.msk [vmem:[#allocation12 + $0xc] sm:$0xf] %vm1227_vm6, %v1349_v14 }
 0x676   :  { %1678 = shalt.err (!%p1675_p0)
}
 0x677   :  { %s1679_s29 = scalar_lea.hbm %s2359_s3, 256 }
 0x678   :  { %p1680_p1 = scmp.ne.s32.totalorder %s2359_s3, %s1679_s29  ;;  %p1683_p2 = scmp.lt.u32.totalorder %s1679_s29, %s2359_s3 }
 0x67a   :  { %p1685_p3 = pnand %p1683_p2, %p1680_p1 }
 0x67c   :  { %1688 = shalt.err (!%p1685_p3)
}
 0x67d   :  { %1365 = dma.vmem_to_hbm [thread:$0]  %s1360_s25, 256, %s2359_s3, [#allocation8], %s1699_s1, %s1699_s1, %s1700_s9  }
 0x67e   :  { %1693 = dma.done.wait [#allocation8], 256  }
 0x67f   :  { %1694 = vsyncadd [#allocation8], 4294967040 }
 0x680   :  { %1369 = vsyncpa [#allocation7], 1 }
 0x681   :  { %1370 = vsyncpa [#allocation10], 1 }
 0x682   :  { %1371 = vsyncpa [#allocation8], 1 }

</bundles_post_ra>
